<compile_context>
chip_gen: v7x
topology: tpu7x:2x2x1
jax: 0.10.0
libtpu: 0.0.40
codegen_flags: <defaults>
</compile_context>

<pallas_src>
import numpy as np
import jax
import jax.numpy as jnp
from jax import lax
from jax.experimental import pallas as pl
from jax.experimental.pallas import tpu as pltpu


def _round_up(x, m):
    return (x + m - 1) // m * m


# ----------------------------- LSTM kernel ---------------------------------
def _lstm_kernel(x_ref, w_ref, b_ref, out_ref):
    # x_ref:   (T1, B_pad, E_pad)        whole sequence, resident in VMEM
    # w_ref:   (E_pad + H_pad, 4*H_pad)  packed [W_ih^T ; W_hh^T], per-gate 128-padded cols
    # b_ref:   (1, 4*H_pad)              b_ih + b_hh, per-gate 128-padded
    # out_ref: (T1, B_pad, H_pad)
    T1 = x_ref.shape[0]
    B = x_ref.shape[1]
    H = out_ref.shape[2]          # padded hidden size (multiple of 128)

    w = w_ref[...]                                         # loaded once, VMEM resident
    bias = jnp.broadcast_to(b_ref[...], (B, 4 * H))        # hoisted: broadcast exactly once

    def step(t, carry):
        h, c = carry
        # single MXU matmul per step: concat along a 128-lane boundary (lane-aligned)
        xh = jnp.concatenate([x_ref[t], h], axis=1)        # (B, E_pad + H_pad)
        gates = jnp.dot(xh, w, preferred_element_type=jnp.float32) + bias  # (B, 4*H)

        # gate slices are 128-lane aligned -> whole-vreg VPU/EUP ops, no XLU traffic
        i_g = jax.nn.sigmoid(gates[:, 0 * H:1 * H])
        f_g = jax.nn.sigmoid(gates[:, 1 * H:2 * H])
        g_g = jnp.tanh(gates[:, 2 * H:3 * H])
        o_g = jax.nn.sigmoid(gates[:, 3 * H:4 * H])

        c_new = f_g * c + i_g * g_g
        h_new = o_g * jnp.tanh(c_new)
        out_ref[t] = h_new
        return (h_new, c_new)

    h0 = jnp.zeros((B, H), jnp.float32)
    c0 = jnp.zeros((B, H), jnp.float32)
    # short fixed trip count -> fully unroll for LLO scheduling visibility
    lax.fori_loop(0, T1, step, (h0, c0), unroll=True)


def _pack_lstm_weights(w_ih, w_hh, b_ih, b_hh, E_pad, H_pad):
    """Pack PyTorch-layout LSTM weights into one (E_pad+H_pad, 4*H_pad) matrix with
    per-gate lane-padded columns (gate order i, f, g, o preserved)."""
    H4, E = w_ih.shape
    H = H4 // 4
    wih_t = jnp.transpose(w_ih)          # (E, 4H)
    whh_t = jnp.transpose(w_hh)          # (H, 4H)
    bias = (b_ih + b_hh).reshape(1, 4 * H)

    def pad_gate_cols(m):                # (K, 4H) -> (K, 4*H_pad)
        parts = []
        for g in range(4):
            blk = m[:, g * H:(g + 1) * H]
            parts.append(jnp.pad(blk, ((0, 0), (0, H_pad - H))))
        return jnp.concatenate(parts, axis=1)

    wih_p = jnp.pad(pad_gate_cols(wih_t), ((0, E_pad - E), (0, 0)))   # (E_pad, 4*H_pad)
    whh_p = jnp.pad(pad_gate_cols(whh_t), ((0, H_pad - H), (0, 0)))   # (H_pad, 4*H_pad)
    w_packed = jnp.concatenate([wih_p, whh_p], axis=0)                # (E_pad+H_pad, 4*H_pad)
    b_packed = pad_gate_cols(bias)                                    # (1, 4*H_pad)
    return w_packed, b_packed


def lstm_time_major(x_tm, w_ih, w_hh, b_ih, b_hh):
    """x_tm: (T1, B, E) float32. Returns padded hiddens (T1, B_pad, H_pad) float32
    (padded rows/columns are exactly zero)."""
    T1, B, E = x_tm.shape
    H = w_hh.shape[1]
    B_pad = _round_up(B, 8)
    E_pad = _round_up(E, 128)
    H_pad = _round_up(H, 128)

    w_packed, b_packed = _pack_lstm_weights(w_ih, w_hh, b_ih, b_hh, E_pad, H_pad)
    x_pad = jnp.zeros((T1, B_pad, E_pad), jnp.float32).at[:, :B, :E].set(x_tm)

    return pl.pallas_call(
        _lstm_kernel,
        out_shape=jax.ShapeDtypeStruct((T1, B_pad, H_pad), jnp.float32),
        grid_spec=pltpu.PrefetchScalarGridSpec(
            num_scalar_prefetch=0,
            grid=(1,),  # single grid step: whole recurrence runs in-kernel
            in_specs=[
                pl.BlockSpec((T1, B_pad, E_pad), lambda i: (0, 0, 0)),
                pl.BlockSpec((E_pad + H_pad, 4 * H_pad), lambda i: (0, 0)),
                pl.BlockSpec((1, 4 * H_pad), lambda i: (0, 0)),
            ],
            out_specs=pl.BlockSpec((T1, B_pad, H_pad), lambda i: (0, 0, 0)),
        ),
        compiler_params=pltpu.CompilerParams(
            dimension_semantics=("arbitrary",)
        ),
    )(x_pad, w_packed, b_packed)


# ----------------------------- Linear kernel --------------------------------
def _linear_kernel(x_ref, w_ref, b_ref, o_ref):
    o_ref[...] = (
        jnp.dot(x_ref[...], w_ref[...], preferred_element_type=jnp.float32)
        + b_ref[...]
    ).astype(o_ref.dtype)


def linear_padded(x, w, b):
    """x: (N, H_pad) with zero-padded H columns; w: (V, H) PyTorch layout; b: (V,).
    Returns (N, V) float32."""
    N, H_pad = x.shape
    V, H = w.shape
    V_pad = _round_up(V, 128)
    N_pad = _round_up(N, 8)
    TN = N_pad if N_pad <= 512 else 512
    N_pad = _round_up(N_pad, TN)
    TV = 128

    x_p = jnp.zeros((N_pad, H_pad), jnp.float32).at[:N].set(x)
    w_t = jnp.zeros((H_pad, V_pad), jnp.float32).at[:H, :V].set(jnp.transpose(w))
    b_p = jnp.zeros((1, V_pad), jnp.float32).at[0, :V].set(b)

    out = pl.pallas_call(
        _linear_kernel,
        out_shape=jax.ShapeDtypeStruct((N_pad, V_pad), jnp.float32),
        grid_spec=pltpu.PrefetchScalarGridSpec(
            num_scalar_prefetch=0,
            grid=(N_pad // TN, V_pad // TV),
            in_specs=[
                pl.BlockSpec((TN, H_pad), lambda i, j: (i, 0)),
                pl.BlockSpec((H_pad, TV), lambda i, j: (0, j)),
                pl.BlockSpec((1, TV), lambda i, j: (0, j)),
            ],
            out_specs=pl.BlockSpec((TN, TV), lambda i, j: (i, j)),
        ),
        compiler_params=pltpu.CompilerParams(
            dimension_semantics=("parallel", "parallel")
        ),
    )(x_p, w_t, b_p)
    return out[:N, :V]


# ----------------------------- Decoder forward ------------------------------
def decoder_forward(params, features, captions, lengths):
    """
    features: (B, E) float32
    captions: (B, T) int32
    lengths:  python list of ints, sorted descending, each <= T+1
    returns:  (sum(lengths), vocab_size) float32 -- same as PyTorch Decoder.forward
    """
    # embedding lookup + concat features as first timestep (glue, plain JAX)
    embeds = jnp.take(params["embedding"], captions, axis=0)          # (B, T, E)
    embeds = jnp.concatenate([features[:, None, :], embeds], axis=1)  # (B, T+1, E)
    x_tm = jnp.transpose(embeds, (1, 0, 2)).astype(jnp.float32)       # (T+1, B, E)

    # LSTM over the full padded sequence (valid packed outputs are identical)
    hiddens_pad = lstm_time_major(
        x_tm, params["w_ih"], params["w_hh"], params["b_ih"], params["b_hh"]
    )  # (T+1, B_pad, H_pad), pad rows/cols are zero

    # pack_padded_sequence row order gather; result stays H_pad lane-dense
    t_idx, b_idx = [], []
    max_len = max(lengths)
    for t in range(max_len):
        for b, L in enumerate(lengths):
            if L > t:
                t_idx.append(t)
                b_idx.append(b)
    packed = hiddens_pad[jnp.asarray(t_idx), jnp.asarray(b_idx)]  # (N, H_pad)

    # final projection (tiled, lane-dense Pallas matmul)
    return linear_padded(packed, params["w_lin"], params["b_lin"])


# TODO(synk): Decoder.sample (greedy autoregressive decode) not implemented here.


# ----------------------------- pure-JAX reference ---------------------------
def _reference(params, features, captions, lengths):
    embeds = jnp.take(params["embedding"], captions, axis=0)
    embeds = jnp.concatenate([features[:, None, :], embeds], axis=1)
    x_tm = jnp.transpose(embeds, (1, 0, 2))
    H = params["w_hh"].shape[1]
    B = features.shape[0]

    def step(carry, x):
        h, c = carry
        gates = x @ params["w_ih"].T + h @ params["w_hh"].T + params["b_ih"] + params["b_hh"]
        i = jax.nn.sigmoid(gates[:, 0 * H:1 * H])
        f = jax.nn.sigmoid(gates[:, 1 * H:2 * H])
        g = jnp.tanh(gates[:, 2 * H:3 * H])
        o = jax.nn.sigmoid(gates[:, 3 * H:4 * H])
        c = f * c + i * g
        h = o * jnp.tanh(c)
        return (h, c), h

    init = (jnp.zeros((B, H), jnp.float32), jnp.zeros((B, H), jnp.float32))
    _, hs = lax.scan(step, init, x_tm)
    t_idx, b_idx = [], []
    for t in range(max(lengths)):
        for b, L in enumerate(lengths):
            if L > t:
                t_idx.append(t)
                b_idx.append(b)
    packed = hs[jnp.asarray(t_idx), jnp.asarray(b_idx)]
    return packed @ params["w_lin"].T + params["b_lin"]


# ----------------------------- main ------------------------------------------
if __name__ == "__main__":
    # small shapes
    B, T, E, H, V = 4, 7, 32, 32, 40
    lengths = [8, 7, 5, 3]  # sorted descending, <= T+1

    key = jax.random.PRNGKey(0)
    ks = jax.random.split(key, 9)
    params = {
        "embedding": 0.1 * jax.random.normal(ks[0], (V, E), jnp.float32),
        "w_ih": 0.1 * jax.random.normal(ks[1], (4 * H, E), jnp.float32),
        "w_hh": 0.1 * jax.random.normal(ks[2], (4 * H, H), jnp.float32),
        "b_ih": 0.1 * jax.random.normal(ks[3], (4 * H,), jnp.float32),
        "b_hh": 0.1 * jax.random.normal(ks[4], (4 * H,), jnp.float32),
        "w_lin": 0.1 * jax.random.normal(ks[5], (V, H), jnp.float32),
        "b_lin": 0.1 * jax.random.normal(ks[6], (V,), jnp.float32),
    }

    features = jax.random.normal(ks[7], (B, E), jnp.float32)
    captions = jax.random.randint(ks[8], (B, T), 0, V, jnp.int32)

    out = decoder_forward(params, features, captions, lengths)
    out = jax.block_until_ready(out)

    ref = _reference(params, features, captions, lengths)
    assert out.shape == (sum(lengths), V), out.shape
    np.testing.assert_allclose(np.asarray(out), np.asarray(ref), rtol=1e-4, atol=1e-4)

    print("KERNEL_OK")
</pallas_src>

<mosaic_0001>
module attributes {stable_mosaic.version = 11 : i64} {
  func.func @_lstm_kernel(%arg0: i32, %arg1: memref<8x8x128xf32, #tpu.memory_space<vmem>>, %arg2: memref<256x512xf32, #tpu.memory_space<vmem>>, %arg3: memref<1x512xf32, #tpu.memory_space<vmem>>, %arg4: memref<8x8x128xf32, #tpu.memory_space<vmem>>) attributes {dimension_semantics = [#tpu.dimension_semantics<arbitrary>], iteration_bounds = array<i64: 1>, scalar_prefetch = 0 : i64, scratch_operands = 0 : i64, tpu.core_type = #tpu.core_type<tc>, window_params = [{pipeline_mode = #tpu.pipeline_mode<synchronous>, transform_indices = @transform_0, window_bounds = array<i64: 8, 8, 128>}, {pipeline_mode = #tpu.pipeline_mode<synchronous>, transform_indices = @transform_1, window_bounds = array<i64: 256, 512>}, {pipeline_mode = #tpu.pipeline_mode<synchronous>, transform_indices = @transform_2, window_bounds = array<i64: 1, 512>}, {pipeline_mode = #tpu.pipeline_mode<synchronous>, transform_indices = @transform_3, window_bounds = array<i64: 8, 8, 128>}]} {
    %c0 = arith.constant 0 : index
    %c0_0 = arith.constant 0 : index
    %0 = vector.load %arg2[%c0, %c0_0] : memref<256x512xf32, #tpu.memory_space<vmem>>, vector<256x512xf32>
    %c0_1 = arith.constant 0 : index
    %c0_2 = arith.constant 0 : index
    %1 = vector.load %arg3[%c0_1, %c0_2] : memref<1x512xf32, #tpu.memory_space<vmem>>, vector<1x512xf32>
    %2 = vector.shape_cast %1 : vector<1x512xf32> to vector<1x512xf32>
    %3 = vector.broadcast %2 : vector<1x512xf32> to vector<8x512xf32>
    %cst = arith.constant 0.000000e+00 : f32
    %4 = vector.broadcast %cst : f32 to vector<8x128xf32>
    %cst_3 = arith.constant 0.000000e+00 : f32
    %5 = vector.broadcast %cst_3 : f32 to vector<8x128xf32>
    %c0_i32 = arith.constant 0 : i32
    %6 = arith.index_cast %c0_i32 : i32 to index
    %c0_4 = arith.constant 0 : index
    %c0_5 = arith.constant 0 : index
    %7 = vector.load %arg1[%6, %c0_4, %c0_5] : memref<8x8x128xf32, #tpu.memory_space<vmem>>, vector<1x8x128xf32>
    %8 = vector.shape_cast %7 : vector<1x8x128xf32> to vector<8x128xf32>
    %9 = tpu.concatenate %8, %4 in 1 : vector<8x128xf32>, vector<8x128xf32> -> vector<8x256xf32>
    %cst_6 = arith.constant dense<0.000000e+00> : vector<8x512xf32>
    %10 = tpu.matmul %9, %0, %cst_6 {dimension_numbers = #tpu.dot_dimension_numbers<[1], [0], [0], [1], [0, 0, 1, 1], [], []>} : vector<8x256xf32>, vector<256x512xf32>, vector<8x512xf32> -> vector<8x512xf32>
    %11 = arith.addf %10, %3 : vector<8x512xf32>
    %12 = vector.extract_strided_slice %11 {offsets = [0, 0], sizes = [8, 128], strides = [1, 1]} : vector<8x512xf32> to vector<8x128xf32>
    %13 = arith.negf %12 : vector<8x128xf32>
    %14 = math.exp %13 : vector<8x128xf32>
    %cst_7 = arith.constant 1.000000e+00 : f32
    %15 = vector.broadcast %cst_7 : f32 to vector<8x128xf32>
    %16 = arith.addf %15, %14 : vector<8x128xf32>
    %17 = arith.divf %15, %16 : vector<8x128xf32>
    %18 = vector.extract_strided_slice %11 {offsets = [0, 128], sizes = [8, 128], strides = [1, 1]} : vector<8x512xf32> to vector<8x128xf32>
    %19 = arith.negf %18 : vector<8x128xf32>
    %20 = math.exp %19 : vector<8x128xf32>
    %cst_8 = arith.constant 1.000000e+00 : f32
    %21 = vector.broadcast %cst_8 : f32 to vector<8x128xf32>
    %22 = arith.addf %21, %20 : vector<8x128xf32>
    %23 = arith.divf %21, %22 : vector<8x128xf32>
    %24 = vector.extract_strided_slice %11 {offsets = [0, 256], sizes = [8, 128], strides = [1, 1]} : vector<8x512xf32> to vector<8x128xf32>
    %25 = math.tanh %24 : vector<8x128xf32>
    %26 = vector.extract_strided_slice %11 {offsets = [0, 384], sizes = [8, 128], strides = [1, 1]} : vector<8x512xf32> to vector<8x128xf32>
    %27 = arith.negf %26 : vector<8x128xf32>
    %28 = math.exp %27 : vector<8x128xf32>
    %cst_9 = arith.constant 1.000000e+00 : f32
    %29 = vector.broadcast %cst_9 : f32 to vector<8x128xf32>
    %30 = arith.addf %29, %28 : vector<8x128xf32>
    %31 = arith.divf %29, %30 : vector<8x128xf32>
    %32 = arith.mulf %23, %5 : vector<8x128xf32>
    %33 = arith.mulf %17, %25 : vector<8x128xf32>
    %34 = arith.addf %32, %33 : vector<8x128xf32>
    %35 = math.tanh %34 : vector<8x128xf32>
    %36 = arith.mulf %31, %35 : vector<8x128xf32>
    %37 = arith.index_cast %c0_i32 : i32 to index
    %c0_10 = arith.constant 0 : index
    %c0_11 = arith.constant 0 : index
    %38 = vector.load %arg4[%37, %c0_10, %c0_11] : memref<8x8x128xf32, #tpu.memory_space<vmem>>, vector<1x8x128xf32>
    %39 = vector.shape_cast %38 : vector<1x8x128xf32> to vector<8x128xf32>
    %40 = vector.shape_cast %36 : vector<8x128xf32> to vector<1x8x128xf32>
    tpu.vector_store %arg4[%37, %c0_10, %c0_11], %40 {strides = array<i32>} : memref<8x8x128xf32, #tpu.memory_space<vmem>>, vector<1x8x128xf32>,
    %c1_i32 = arith.constant 1 : i32
    %41 = arith.index_cast %c1_i32 : i32 to index
    %c0_12 = arith.constant 0 : index
    %c0_13 = arith.constant 0 : index
    %42 = vector.load %arg1[%41, %c0_12, %c0_13] : memref<8x8x128xf32, #tpu.memory_space<vmem>>, vector<1x8x128xf32>
    %43 = vector.shape_cast %42 : vector<1x8x128xf32> to vector<8x128xf32>
    %44 = tpu.concatenate %43, %36 in 1 : vector<8x128xf32>, vector<8x128xf32> -> vector<8x256xf32>
    %cst_14 = arith.constant dense<0.000000e+00> : vector<8x512xf32>
    %45 = tpu.matmul %44, %0, %cst_14 {dimension_numbers = #tpu.dot_dimension_numbers<[1], [0], [0], [1], [0, 0, 1, 1], [], []>} : vector<8x256xf32>, vector<256x512xf32>, vector<8x512xf32> -> vector<8x512xf32>
    %46 = arith.addf %45, %3 : vector<8x512xf32>
    %47 = vector.extract_strided_slice %46 {offsets = [0, 0], sizes = [8, 128], strides = [1, 1]} : vector<8x512xf32> to vector<8x128xf32>
    %48 = arith.negf %47 : vector<8x128xf32>
    %49 = math.exp %48 : vector<8x128xf32>
    %cst_15 = arith.constant 1.000000e+00 : f32
    %50 = vector.broadcast %cst_15 : f32 to vector<8x128xf32>
    %51 = arith.addf %50, %49 : vector<8x128xf32>
    %52 = arith.divf %50, %51 : vector<8x128xf32>
    %53 = vector.extract_strided_slice %46 {offsets = [0, 128], sizes = [8, 128], strides = [1, 1]} : vector<8x512xf32> to vector<8x128xf32>
    %54 = arith.negf %53 : vector<8x128xf32>
    %55 = math.exp %54 : vector<8x128xf32>
    %cst_16 = arith.constant 1.000000e+00 : f32
    %56 = vector.broadcast %cst_16 : f32 to vector<8x128xf32>
    %57 = arith.addf %56, %55 : vector<8x128xf32>
    %58 = arith.divf %56, %57 : vector<8x128xf32>
    %59 = vector.extract_strided_slice %46 {offsets = [0, 256], sizes = [8, 128], strides = [1, 1]} : vector<8x512xf32> to vector<8x128xf32>
    %60 = math.tanh %59 : vector<8x128xf32>
    %61 = vector.extract_strided_slice %46 {offsets = [0, 384], sizes = [8, 128], strides = [1, 1]} : vector<8x512xf32> to vector<8x128xf32>
    %62 = arith.negf %61 : vector<8x128xf32>
    %63 = math.exp %62 : vector<8x128xf32>
    %cst_17 = arith.constant 1.000000e+00 : f32
    %64 = vector.broadcast %cst_17 : f32 to vector<8x128xf32>
    %65 = arith.addf %64, %63 : vector<8x128xf32>
    %66 = arith.divf %64, %65 : vector<8x128xf32>
    %67 = arith.mulf %58, %34 : vector<8x128xf32>
    %68 = arith.mulf %52, %60 : vector<8x128xf32>
    %69 = arith.addf %67, %68 : vector<8x128xf32>
    %70 = math.tanh %69 : vector<8x128xf32>
    %71 = arith.mulf %66, %70 : vector<8x128xf32>
    %72 = arith.index_cast %c1_i32 : i32 to index
    %c0_18 = arith.constant 0 : index
    %c0_19 = arith.constant 0 : index
    %73 = vector.load %arg4[%72, %c0_18, %c0_19] : memref<8x8x128xf32, #tpu.memory_space<vmem>>, vector<1x8x128xf32>
    %74 = vector.shape_cast %73 : vector<1x8x128xf32> to vector<8x128xf32>
    %75 = vector.shape_cast %71 : vector<8x128xf32> to vector<1x8x128xf32>
    tpu.vector_store %arg4[%72, %c0_18, %c0_19], %75 {strides = array<i32>} : memref<8x8x128xf32, #tpu.memory_space<vmem>>, vector<1x8x128xf32>,
    %c2_i32 = arith.constant 2 : i32
    %76 = arith.index_cast %c2_i32 : i32 to index
    %c0_20 = arith.constant 0 : index
    %c0_21 = arith.constant 0 : index
    %77 = vector.load %arg1[%76, %c0_20, %c0_21] : memref<8x8x128xf32, #tpu.memory_space<vmem>>, vector<1x8x128xf32>
    %78 = vector.shape_cast %77 : vector<1x8x128xf32> to vector<8x128xf32>
    %79 = tpu.concatenate %78, %71 in 1 : vector<8x128xf32>, vector<8x128xf32> -> vector<8x256xf32>
    %cst_22 = arith.constant dense<0.000000e+00> : vector<8x512xf32>
    %80 = tpu.matmul %79, %0, %cst_22 {dimension_numbers = #tpu.dot_dimension_numbers<[1], [0], [0], [1], [0, 0, 1, 1], [], []>} : vector<8x256xf32>, vector<256x512xf32>, vector<8x512xf32> -> vector<8x512xf32>
    %81 = arith.addf %80, %3 : vector<8x512xf32>
    %82 = vector.extract_strided_slice %81 {offsets = [0, 0], sizes = [8, 128], strides = [1, 1]} : vector<8x512xf32> to vector<8x128xf32>
    %83 = arith.negf %82 : vector<8x128xf32>
    %84 = math.exp %83 : vector<8x128xf32>
    %cst_23 = arith.constant 1.000000e+00 : f32
    %85 = vector.broadcast %cst_23 : f32 to vector<8x128xf32>
    %86 = arith.addf %85, %84 : vector<8x128xf32>
    %87 = arith.divf %85, %86 : vector<8x128xf32>
    %88 = vector.extract_strided_slice %81 {offsets = [0, 128], sizes = [8, 128], strides = [1, 1]} : vector<8x512xf32> to vector<8x128xf32>
    %89 = arith.negf %88 : vector<8x128xf32>
    %90 = math.exp %89 : vector<8x128xf32>
    %cst_24 = arith.constant 1.000000e+00 : f32
    %91 = vector.broadcast %cst_24 : f32 to vector<8x128xf32>
    %92 = arith.addf %91, %90 : vector<8x128xf32>
    %93 = arith.divf %91, %92 : vector<8x128xf32>
    %94 = vector.extract_strided_slice %81 {offsets = [0, 256], sizes = [8, 128], strides = [1, 1]} : vector<8x512xf32> to vector<8x128xf32>
    %95 = math.tanh %94 : vector<8x128xf32>
    %96 = vector.extract_strided_slice %81 {offsets = [0, 384], sizes = [8, 128], strides = [1, 1]} : vector<8x512xf32> to vector<8x128xf32>
    %97 = arith.negf %96 : vector<8x128xf32>
    %98 = math.exp %97 : vector<8x128xf32>
    %cst_25 = arith.constant 1.000000e+00 : f32
    %99 = vector.broadcast %cst_25 : f32 to vector<8x128xf32>
    %100 = arith.addf %99, %98 : vector<8x128xf32>
    %101 = arith.divf %99, %100 : vector<8x128xf32>
    %102 = arith.mulf %93, %69 : vector<8x128xf32>
    %103 = arith.mulf %87, %95 : vector<8x128xf32>
    %104 = arith.addf %102, %103 : vector<8x128xf32>
    %105 = math.tanh %104 : vector<8x128xf32>
    %106 = arith.mulf %101, %105 : vector<8x128xf32>
    %107 = arith.index_cast %c2_i32 : i32 to index
    %c0_26 = arith.constant 0 : index
    %c0_27 = arith.constant 0 : index
    %108 = vector.load %arg4[%107, %c0_26, %c0_27] : memref<8x8x128xf32, #tpu.memory_space<vmem>>, vector<1x8x128xf32>
    %109 = vector.shape_cast %108 : vector<1x8x128xf32> to vector<8x128xf32>
    %110 = vector.shape_cast %106 : vector<8x128xf32> to vector<1x8x128xf32>
    tpu.vector_store %arg4[%107, %c0_26, %c0_27], %110 {strides = array<i32>} : memref<8x8x128xf32, #tpu.memory_space<vmem>>, vector<1x8x128xf32>,
    %c3_i32 = arith.constant 3 : i32
    %111 = arith.index_cast %c3_i32 : i32 to index
    %c0_28 = arith.constant 0 : index
    %c0_29 = arith.constant 0 : index
    %112 = vector.load %arg1[%111, %c0_28, %c0_29] : memref<8x8x128xf32, #tpu.memory_space<vmem>>, vector<1x8x128xf32>
    %113 = vector.shape_cast %112 : vector<1x8x128xf32> to vector<8x128xf32>
    %114 = tpu.concatenate %113, %106 in 1 : vector<8x128xf32>, vector<8x128xf32> -> vector<8x256xf32>
    %cst_30 = arith.constant dense<0.000000e+00> : vector<8x512xf32>
    %115 = tpu.matmul %114, %0, %cst_30 {dimension_numbers = #tpu.dot_dimension_numbers<[1], [0], [0], [1], [0, 0, 1, 1], [], []>} : vector<8x256xf32>, vector<256x512xf32>, vector<8x512xf32> -> vector<8x512xf32>
    %116 = arith.addf %115, %3 : vector<8x512xf32>
    %117 = vector.extract_strided_slice %116 {offsets = [0, 0], sizes = [8, 128], strides = [1, 1]} : vector<8x512xf32> to vector<8x128xf32>
    %118 = arith.negf %117 : vector<8x128xf32>
    %119 = math.exp %118 : vector<8x128xf32>
    %cst_31 = arith.constant 1.000000e+00 : f32
    %120 = vector.broadcast %cst_31 : f32 to vector<8x128xf32>
    %121 = arith.addf %120, %119 : vector<8x128xf32>
    %122 = arith.divf %120, %121 : vector<8x128xf32>
    %123 = vector.extract_strided_slice %116 {offsets = [0, 128], sizes = [8, 128], strides = [1, 1]} : vector<8x512xf32> to vector<8x128xf32>
    %124 = arith.negf %123 : vector<8x128xf32>
    %125 = math.exp %124 : vector<8x128xf32>
    %cst_32 = arith.constant 1.000000e+00 : f32
    %126 = vector.broadcast %cst_32 : f32 to vector<8x128xf32>
    %127 = arith.addf %126, %125 : vector<8x128xf32>
    %128 = arith.divf %126, %127 : vector<8x128xf32>
    %129 = vector.extract_strided_slice %116 {offsets = [0, 256], sizes = [8, 128], strides = [1, 1]} : vector<8x512xf32> to vector<8x128xf32>
    %130 = math.tanh %129 : vector<8x128xf32>
    %131 = vector.extract_strided_slice %116 {offsets = [0, 384], sizes = [8, 128], strides = [1, 1]} : vector<8x512xf32> to vector<8x128xf32>
    %132 = arith.negf %131 : vector<8x128xf32>
    %133 = math.exp %132 : vector<8x128xf32>
    %cst_33 = arith.constant 1.000000e+00 : f32
    %134 = vector.broadcast %cst_33 : f32 to vector<8x128xf32>
    %135 = arith.addf %134, %133 : vector<8x128xf32>
    %136 = arith.divf %134, %135 : vector<8x128xf32>
    %137 = arith.mulf %128, %104 : vector<8x128xf32>
    %138 = arith.mulf %122, %130 : vector<8x128xf32>
    %139 = arith.addf %137, %138 : vector<8x128xf32>
    %140 = math.tanh %139 : vector<8x128xf32>
    %141 = arith.mulf %136, %140 : vector<8x128xf32>
    %142 = arith.index_cast %c3_i32 : i32 to index
    %c0_34 = arith.constant 0 : index
    %c0_35 = arith.constant 0 : index
    %143 = vector.load %arg4[%142, %c0_34, %c0_35] : memref<8x8x128xf32, #tpu.memory_space<vmem>>, vector<1x8x128xf32>
    %144 = vector.shape_cast %143 : vector<1x8x128xf32> to vector<8x128xf32>
    %145 = vector.shape_cast %141 : vector<8x128xf32> to vector<1x8x128xf32>
    tpu.vector_store %arg4[%142, %c0_34, %c0_35], %145 {strides = array<i32>} : memref<8x8x128xf32, #tpu.memory_space<vmem>>, vector<1x8x128xf32>,
    %c4_i32 = arith.constant 4 : i32
    %146 = arith.index_cast %c4_i32 : i32 to index
    %c0_36 = arith.constant 0 : index
    %c0_37 = arith.constant 0 : index
    %147 = vector.load %arg1[%146, %c0_36, %c0_37] : memref<8x8x128xf32, #tpu.memory_space<vmem>>, vector<1x8x128xf32>
    %148 = vector.shape_cast %147 : vector<1x8x128xf32> to vector<8x128xf32>
    %149 = tpu.concatenate %148, %141 in 1 : vector<8x128xf32>, vector<8x128xf32> -> vector<8x256xf32>
    %cst_38 = arith.constant dense<0.000000e+00> : vector<8x512xf32>
    %150 = tpu.matmul %149, %0, %cst_38 {dimension_numbers = #tpu.dot_dimension_numbers<[1], [0], [0], [1], [0, 0, 1, 1], [], []>} : vector<8x256xf32>, vector<256x512xf32>, vector<8x512xf32> -> vector<8x512xf32>
    %151 = arith.addf %150, %3 : vector<8x512xf32>
    %152 = vector.extract_strided_slice %151 {offsets = [0, 0], sizes = [8, 128], strides = [1, 1]} : vector<8x512xf32> to vector<8x128xf32>
    %153 = arith.negf %152 : vector<8x128xf32>
    %154 = math.exp %153 : vector<8x128xf32>
    %cst_39 = arith.constant 1.000000e+00 : f32
    %155 = vector.broadcast %cst_39 : f32 to vector<8x128xf32>
    %156 = arith.addf %155, %154 : vector<8x128xf32>
    %157 = arith.divf %155, %156 : vector<8x128xf32>
    %158 = vector.extract_strided_slice %151 {offsets = [0, 128], sizes = [8, 128], strides = [1, 1]} : vector<8x512xf32> to vector<8x128xf32>
    %159 = arith.negf %158 : vector<8x128xf32>
    %160 = math.exp %159 : vector<8x128xf32>
    %cst_40 = arith.constant 1.000000e+00 : f32
    %161 = vector.broadcast %cst_40 : f32 to vector<8x128xf32>
    %162 = arith.addf %161, %160 : vector<8x128xf32>
    %163 = arith.divf %161, %162 : vector<8x128xf32>
    %164 = vector.extract_strided_slice %151 {offsets = [0, 256], sizes = [8, 128], strides = [1, 1]} : vector<8x512xf32> to vector<8x128xf32>
    %165 = math.tanh %164 : vector<8x128xf32>
    %166 = vector.extract_strided_slice %151 {offsets = [0, 384], sizes = [8, 128], strides = [1, 1]} : vector<8x512xf32> to vector<8x128xf32>
    %167 = arith.negf %166 : vector<8x128xf32>
    %168 = math.exp %167 : vector<8x128xf32>
    %cst_41 = arith.constant 1.000000e+00 : f32
    %169 = vector.broadcast %cst_41 : f32 to vector<8x128xf32>
    %170 = arith.addf %169, %168 : vector<8x128xf32>
    %171 = arith.divf %169, %170 : vector<8x128xf32>
    %172 = arith.mulf %163, %139 : vector<8x128xf32>
    %173 = arith.mulf %157, %165 : vector<8x128xf32>
    %174 = arith.addf %172, %173 : vector<8x128xf32>
    %175 = math.tanh %174 : vector<8x128xf32>
    %176 = arith.mulf %171, %175 : vector<8x128xf32>
    %177 = arith.index_cast %c4_i32 : i32 to index
    %c0_42 = arith.constant 0 : index
    %c0_43 = arith.constant 0 : index
    %178 = vector.load %arg4[%177, %c0_42, %c0_43] : memref<8x8x128xf32, #tpu.memory_space<vmem>>, vector<1x8x128xf32>
    %179 = vector.shape_cast %178 : vector<1x8x128xf32> to vector<8x128xf32>
    %180 = vector.shape_cast %176 : vector<8x128xf32> to vector<1x8x128xf32>
    tpu.vector_store %arg4[%177, %c0_42, %c0_43], %180 {strides = array<i32>} : memref<8x8x128xf32, #tpu.memory_space<vmem>>, vector<1x8x128xf32>,
    %c5_i32 = arith.constant 5 : i32
    %181 = arith.index_cast %c5_i32 : i32 to index
    %c0_44 = arith.constant 0 : index
    %c0_45 = arith.constant 0 : index
    %182 = vector.load %arg1[%181, %c0_44, %c0_45] : memref<8x8x128xf32, #tpu.memory_space<vmem>>, vector<1x8x128xf32>
    %183 = vector.shape_cast %182 : vector<1x8x128xf32> to vector<8x128xf32>
    %184 = tpu.concatenate %183, %176 in 1 : vector<8x128xf32>, vector<8x128xf32> -> vector<8x256xf32>
    %cst_46 = arith.constant dense<0.000000e+00> : vector<8x512xf32>
    %185 = tpu.matmul %184, %0, %cst_46 {dimension_numbers = #tpu.dot_dimension_numbers<[1], [0], [0], [1], [0, 0, 1, 1], [], []>} : vector<8x256xf32>, vector<256x512xf32>, vector<8x512xf32> -> vector<8x512xf32>
    %186 = arith.addf %185, %3 : vector<8x512xf32>
    %187 = vector.extract_strided_slice %186 {offsets = [0, 0], sizes = [8, 128], strides = [1, 1]} : vector<8x512xf32> to vector<8x128xf32>
    %188 = arith.negf %187 : vector<8x128xf32>
    %189 = math.exp %188 : vector<8x128xf32>
    %cst_47 = arith.constant 1.000000e+00 : f32
    %190 = vector.broadcast %cst_47 : f32 to vector<8x128xf32>
    %191 = arith.addf %190, %189 : vector<8x128xf32>
    %192 = arith.divf %190, %191 : vector<8x128xf32>
    %193 = vector.extract_strided_slice %186 {offsets = [0, 128], sizes = [8, 128], strides = [1, 1]} : vector<8x512xf32> to vector<8x128xf32>
    %194 = arith.negf %193 : vector<8x128xf32>
    %195 = math.exp %194 : vector<8x128xf32>
    %cst_48 = arith.constant 1.000000e+00 : f32
    %196 = vector.broadcast %cst_48 : f32 to vector<8x128xf32>
    %197 = arith.addf %196, %195 : vector<8x128xf32>
    %198 = arith.divf %196, %197 : vector<8x128xf32>
    %199 = vector.extract_strided_slice %186 {offsets = [0, 256], sizes = [8, 128], strides = [1, 1]} : vector<8x512xf32> to vector<8x128xf32>
    %200 = math.tanh %199 : vector<8x128xf32>
    %201 = vector.extract_strided_slice %186 {offsets = [0, 384], sizes = [8, 128], strides = [1, 1]} : vector<8x512xf32> to vector<8x128xf32>
    %202 = arith.negf %201 : vector<8x128xf32>
    %203 = math.exp %202 : vector<8x128xf32>
    %cst_49 = arith.constant 1.000000e+00 : f32
    %204 = vector.broadcast %cst_49 : f32 to vector<8x128xf32>
    %205 = arith.addf %204, %203 : vector<8x128xf32>
    %206 = arith.divf %204, %205 : vector<8x128xf32>
    %207 = arith.mulf %198, %174 : vector<8x128xf32>
    %208 = arith.mulf %192, %200 : vector<8x128xf32>
    %209 = arith.addf %207, %208 : vector<8x128xf32>
    %210 = math.tanh %209 : vector<8x128xf32>
    %211 = arith.mulf %206, %210 : vector<8x128xf32>
    %212 = arith.index_cast %c5_i32 : i32 to index
    %c0_50 = arith.constant 0 : index
    %c0_51 = arith.constant 0 : index
    %213 = vector.load %arg4[%212, %c0_50, %c0_51] : memref<8x8x128xf32, #tpu.memory_space<vmem>>, vector<1x8x128xf32>
    %214 = vector.shape_cast %213 : vector<1x8x128xf32> to vector<8x128xf32>
    %215 = vector.shape_cast %211 : vector<8x128xf32> to vector<1x8x128xf32>
    tpu.vector_store %arg4[%212, %c0_50, %c0_51], %215 {strides = array<i32>} : memref<8x8x128xf32, #tpu.memory_space<vmem>>, vector<1x8x128xf32>,
    %c6_i32 = arith.constant 6 : i32
    %216 = arith.index_cast %c6_i32 : i32 to index
    %c0_52 = arith.constant 0 : index
    %c0_53 = arith.constant 0 : index
    %217 = vector.load %arg1[%216, %c0_52, %c0_53] : memref<8x8x128xf32, #tpu.memory_space<vmem>>, vector<1x8x128xf32>
    %218 = vector.shape_cast %217 : vector<1x8x128xf32> to vector<8x128xf32>
    %219 = tpu.concatenate %218, %211 in 1 : vector<8x128xf32>, vector<8x128xf32> -> vector<8x256xf32>
    %cst_54 = arith.constant dense<0.000000e+00> : vector<8x512xf32>
    %220 = tpu.matmul %219, %0, %cst_54 {dimension_numbers = #tpu.dot_dimension_numbers<[1], [0], [0], [1], [0, 0, 1, 1], [], []>} : vector<8x256xf32>, vector<256x512xf32>, vector<8x512xf32> -> vector<8x512xf32>
    %221 = arith.addf %220, %3 : vector<8x512xf32>
    %222 = vector.extract_strided_slice %221 {offsets = [0, 0], sizes = [8, 128], strides = [1, 1]} : vector<8x512xf32> to vector<8x128xf32>
    %223 = arith.negf %222 : vector<8x128xf32>
    %224 = math.exp %223 : vector<8x128xf32>
    %cst_55 = arith.constant 1.000000e+00 : f32
    %225 = vector.broadcast %cst_55 : f32 to vector<8x128xf32>
    %226 = arith.addf %225, %224 : vector<8x128xf32>
    %227 = arith.divf %225, %226 : vector<8x128xf32>
    %228 = vector.extract_strided_slice %221 {offsets = [0, 128], sizes = [8, 128], strides = [1, 1]} : vector<8x512xf32> to vector<8x128xf32>
    %229 = arith.negf %228 : vector<8x128xf32>
    %230 = math.exp %229 : vector<8x128xf32>
    %cst_56 = arith.constant 1.000000e+00 : f32
    %231 = vector.broadcast %cst_56 : f32 to vector<8x128xf32>
    %232 = arith.addf %231, %230 : vector<8x128xf32>
    %233 = arith.divf %231, %232 : vector<8x128xf32>
    %234 = vector.extract_strided_slice %221 {offsets = [0, 256], sizes = [8, 128], strides = [1, 1]} : vector<8x512xf32> to vector<8x128xf32>
    %235 = math.tanh %234 : vector<8x128xf32>
    %236 = vector.extract_strided_slice %221 {offsets = [0, 384], sizes = [8, 128], strides = [1, 1]} : vector<8x512xf32> to vector<8x128xf32>
    %237 = arith.negf %236 : vector<8x128xf32>
    %238 = math.exp %237 : vector<8x128xf32>
    %cst_57 = arith.constant 1.000000e+00 : f32
    %239 = vector.broadcast %cst_57 : f32 to vector<8x128xf32>
    %240 = arith.addf %239, %238 : vector<8x128xf32>
    %241 = arith.divf %239, %240 : vector<8x128xf32>
    %242 = arith.mulf %233, %209 : vector<8x128xf32>
    %243 = arith.mulf %227, %235 : vector<8x128xf32>
    %244 = arith.addf %242, %243 : vector<8x128xf32>
    %245 = math.tanh %244 : vector<8x128xf32>
    %246 = arith.mulf %241, %245 : vector<8x128xf32>
    %247 = arith.index_cast %c6_i32 : i32 to index
    %c0_58 = arith.constant 0 : index
    %c0_59 = arith.constant 0 : index
    %248 = vector.load %arg4[%247, %c0_58, %c0_59] : memref<8x8x128xf32, #tpu.memory_space<vmem>>, vector<1x8x128xf32>
    %249 = vector.shape_cast %248 : vector<1x8x128xf32> to vector<8x128xf32>
    %250 = vector.shape_cast %246 : vector<8x128xf32> to vector<1x8x128xf32>
    tpu.vector_store %arg4[%247, %c0_58, %c0_59], %250 {strides = array<i32>} : memref<8x8x128xf32, #tpu.memory_space<vmem>>, vector<1x8x128xf32>,
    %c7_i32 = arith.constant 7 : i32
    %251 = arith.index_cast %c7_i32 : i32 to index
    %c0_60 = arith.constant 0 : index
    %c0_61 = arith.constant 0 : index
    %252 = vector.load %arg1[%251, %c0_60, %c0_61] : memref<8x8x128xf32, #tpu.memory_space<vmem>>, vector<1x8x128xf32>
    %253 = vector.shape_cast %252 : vector<1x8x128xf32> to vector<8x128xf32>
    %254 = tpu.concatenate %253, %246 in 1 : vector<8x128xf32>, vector<8x128xf32> -> vector<8x256xf32>
    %cst_62 = arith.constant dense<0.000000e+00> : vector<8x512xf32>
    %255 = tpu.matmul %254, %0, %cst_62 {dimension_numbers = #tpu.dot_dimension_numbers<[1], [0], [0], [1], [0, 0, 1, 1], [], []>} : vector<8x256xf32>, vector<256x512xf32>, vector<8x512xf32> -> vector<8x512xf32>
    %256 = arith.addf %255, %3 : vector<8x512xf32>
    %257 = vector.extract_strided_slice %256 {offsets = [0, 0], sizes = [8, 128], strides = [1, 1]} : vector<8x512xf32> to vector<8x128xf32>
    %258 = arith.negf %257 : vector<8x128xf32>
    %259 = math.exp %258 : vector<8x128xf32>
    %cst_63 = arith.constant 1.000000e+00 : f32
    %260 = vector.broadcast %cst_63 : f32 to vector<8x128xf32>
    %261 = arith.addf %260, %259 : vector<8x128xf32>
    %262 = arith.divf %260, %261 : vector<8x128xf32>
    %263 = vector.extract_strided_slice %256 {offsets = [0, 128], sizes = [8, 128], strides = [1, 1]} : vector<8x512xf32> to vector<8x128xf32>
    %264 = arith.negf %263 : vector<8x128xf32>
    %265 = math.exp %264 : vector<8x128xf32>
    %cst_64 = arith.constant 1.000000e+00 : f32
    %266 = vector.broadcast %cst_64 : f32 to vector<8x128xf32>
    %267 = arith.addf %266, %265 : vector<8x128xf32>
    %268 = arith.divf %266, %267 : vector<8x128xf32>
    %269 = vector.extract_strided_slice %256 {offsets = [0, 256], sizes = [8, 128], strides = [1, 1]} : vector<8x512xf32> to vector<8x128xf32>
    %270 = math.tanh %269 : vector<8x128xf32>
    %271 = vector.extract_strided_slice %256 {offsets = [0, 384], sizes = [8, 128], strides = [1, 1]} : vector<8x512xf32> to vector<8x128xf32>
    %272 = arith.negf %271 : vector<8x128xf32>
    %273 = math.exp %272 : vector<8x128xf32>
    %cst_65 = arith.constant 1.000000e+00 : f32
    %274 = vector.broadcast %cst_65 : f32 to vector<8x128xf32>
    %275 = arith.addf %274, %273 : vector<8x128xf32>
    %276 = arith.divf %274, %275 : vector<8x128xf32>
    %277 = arith.mulf %268, %244 : vector<8x128xf32>
    %278 = arith.mulf %262, %270 : vector<8x128xf32>
    %279 = arith.addf %277, %278 : vector<8x128xf32>
    %280 = math.tanh %279 : vector<8x128xf32>
    %281 = arith.mulf %276, %280 : vector<8x128xf32>
    %282 = arith.index_cast %c7_i32 : i32 to index
    %c0_66 = arith.constant 0 : index
    %c0_67 = arith.constant 0 : index
    %283 = vector.load %arg4[%282, %c0_66, %c0_67] : memref<8x8x128xf32, #tpu.memory_space<vmem>>, vector<1x8x128xf32>
    %284 = vector.shape_cast %283 : vector<1x8x128xf32> to vector<8x128xf32>
    %285 = vector.shape_cast %281 : vector<8x128xf32> to vector<1x8x128xf32>
    tpu.vector_store %arg4[%282, %c0_66, %c0_67], %285 {strides = array<i32>} : memref<8x8x128xf32, #tpu.memory_space<vmem>>, vector<1x8x128xf32>,
    %c8_i32 = arith.constant 8 : i32
    return
  }
  func.func @transform_0(%arg0: i32) -> (i32, i32, i32) {
    %c0_i32 = arith.constant 0 : i32
    %c0_i32_0 = arith.constant 0 : i32
    %c0_i32_1 = arith.constant 0 : i32
    %c0_i32_2 = arith.constant 0 : i32
    return %c0_i32, %c0_i32_0, %c0_i32_1 : i32, i32, i32
  }
  func.func @transform_1(%arg0: i32) -> (i32, i32) {
    %c0_i32 = arith.constant 0 : i32
    %c0_i32_0 = arith.constant 0 : i32
    %c0_i32_1 = arith.constant 0 : i32
    return %c0_i32, %c0_i32_0 : i32, i32
  }
  func.func @transform_2(%arg0: i32) -> (i32, i32) {
    %c0_i32 = arith.constant 0 : i32
    %c0_i32_0 = arith.constant 0 : i32
    %c0_i32_1 = arith.constant 0 : i32
    return %c0_i32, %c0_i32_0 : i32, i32
  }
  func.func @transform_3(%arg0: i32) -> (i32, i32, i32) {
    %c0_i32 = arith.constant 0 : i32
    %c0_i32_0 = arith.constant 0 : i32
    %c0_i32_1 = arith.constant 0 : i32
    %c0_i32_2 = arith.constant 0 : i32
    return %c0_i32, %c0_i32_0, %c0_i32_1 : i32, i32, i32
  }
}

</mosaic_0001>

<bundles_post_ra>
// kernel: tpu_custom_call.1
= control target key start
LH: loop header
LB: loop body
LE: loop exit
PB: predicated region body
PF: predicated region fallthrough
CT: control target
= control target key end

     0   :  { %8 = vsyncpa [#allocation3], 0  ;;  %s3602_s0 = inlined_call_operand.hbm [shape: f32[8,8,128], index: 0, kind: input, shape index: {}]   ;;  %s3603_s1 = inlined_call_operand.hbm [shape: f32[256,512], index: 1, kind: input, shape index: {}]   ;;  %s3604_s2 = inlined_call_operand.vmem [shape: f32[1,512], index: 2, kind: input, shape index: {}]   ;;  %s3605_s3 = inlined_call_operand.hbm [shape: f32[8,8,128], index: 3, kind: output, shape index: {}]  }
   0x1   :  { %9 = vsyncpa [#allocation6], 0 }
   0x2   :  { %10 = vsyncpa [#allocation4], 0  ;;  %s2825_s12 = smov [#allocation2]   ;;  %s2753_s16 = scalar_lea.hbm %s3602_s0, 1024 }
   0x3   :  { %s16_s13 = sshll.u32 %s2825_s12, 4  ;;  %p2754_p0 = scmp.ne.s32.totalorder %s3602_s0, %s2753_s16  ;;  %s17_s13 = int_to_ptr.vmem [resolvable:$true] %s16_s13 }
   0x4   :  { %p2757_p1 = scmp.lt.u32.totalorder %s2753_s16, %s3602_s0 }
   0x6   :  { %p2759_p2 = pnand %p2757_p1, %p2754_p0 }
   0x8   :  { %2762 = shalt.err (!%p2759_p2)
}
   0x9   :  { %s2763_s21 = scalar_lea.vmem %s17_s13, 1024  ;;  %p2768_p4 = scmp.lt.s32.totalorder %s17_s13, %s17_s13 }
   0xa   :  { %p2764_p3 = scmp.ne.s32.totalorder %s17_s13, %s2763_s21  ;;  %p2769_p5 = scmp.lt.s32.totalorder %s2763_s21, %s2763_s21 }
   0xc   :  { %p2770_p6 = por %p2769_p5, %p2768_p4 }
   0xe   :  { %p2771_p7 = pnand %p2770_p6, %p2764_p3 }
  0x10   :  { %2774 = shalt.err (!%p2771_p7)
}
  0x11   :  { %s2826_s22 = smov 128   ;;  %s2827_s23 = smov 8  }
  0x12   :  { %22 = dma.hbm_to_vmem [thread:$0]  %s3602_s0, 1024, %s17_s13, [#allocation3], %s2826_s22, %s2826_s22, %s2827_s23  }
  0x13   :  { %s2828_s26 = smov [#allocation5]   ;;  %s2775_s30 = scalar_lea.hbm %s3603_s1, 16384 }
  0x14   :  { %s28_s27 = sshll.u32 %s2828_s26, 4  ;;  %p2776_p8 = scmp.ne.s32.totalorder %s3603_s1, %s2775_s30  ;;  %s29_s27 = int_to_ptr.vmem [resolvable:$true] %s28_s27 }
  0x15   :  { %p2779_p9 = scmp.lt.u32.totalorder %s2775_s30, %s3603_s1 }
  0x17   :  { %p2781_p10 = pnand %p2779_p9, %p2776_p8 }
  0x19   :  { %2784 = shalt.err (!%p2781_p10)
}
  0x1a   :  { %s2785_s8 = scalar_lea.vmem %s29_s27, 16384  ;;  %p2790_p12 = scmp.lt.s32.totalorder %s29_s27, %s29_s27 }
  0x1b   :  { %p2786_p11 = scmp.ne.s32.totalorder %s29_s27, %s2785_s8  ;;  %p2791_p13 = scmp.lt.s32.totalorder %s2785_s8, %s2785_s8 }
  0x1d   :  { %p2792_p0 = por %p2791_p13, %p2790_p12 }
  0x1f   :  { %p2793_p1 = pnand %p2792_p0, %p2786_p11 }
  0x21   :  { %2796 = shalt.err (!%p2793_p1)
}
  0x22   :  { %s2829_s0 = smov 512   ;;  %s2830_s9 = smov 32  }
  0x23   :  { %34 = dma.hbm_to_vmem [thread:$0]  %s3603_s1, 16384, %s29_s27, [#allocation6], %s2829_s0, %s2829_s0, %s2830_s9  }
  0x24   :  { %2819 = dma.done.wait [#allocation3], 1024  }
  0x25   :  { %2820 = vsyncadd [#allocation3], 4294966272 }
  0x26   :  { %2821 = dma.done.wait [#allocation6], 16384  }
  0x27   :  { %2822 = vsyncadd [#allocation6], 4294950912  ;;  %v2831_v0 = vmov 0.0   ;;  %v44_v1 = vld [vmem:[#allocation5 + $0x8] sm:$0xff]  ;;  %v43_v3 = vld [vmem:[#allocation5] sm:$0xff] }
  0x28   :  { %258 = vmatprep.mubr.f32.mxu0 %v2831_v0  ;;  %329 = vmatprep.mubr.f32.mxu1 %v2831_v0  ;;  %v48_v2 = vld [vmem:[#allocation5 + $0x28] sm:$0xff]  ;;  %v47_v5 = vld [vmem:[#allocation5 + $0x20] sm:$0xff]  ;;  %v46_v19 = vld [vmem:[#allocation5 + $0x18] sm:$0xff] }
  0x29   :  { %v2880_v4 = vpack.c.bf16 %v48_v2, %v44_v1  ;;  %v52_v6 = vld [vmem:[#allocation5 + $0x48] sm:$0xff]  ;;  %v2882_v8 = vpack.c.bf16 %v47_v5, %v43_v3  ;;  %v51_v10 = vld [vmem:[#allocation5 + $0x40] sm:$0xff]  ;;  %v50_v20 = vld [vmem:[#allocation5 + $0x38] sm:$0xff] }
  0x2a   :  { %v56_v7 = vld [vmem:[#allocation5 + $0x68] sm:$0xff]  ;;  %v55_v11 = vld [vmem:[#allocation5 + $0x60] sm:$0xff]  ;;  %v2893_v22 = vpack.c.bf16 %v50_v20, %v46_v19  ;;  %v45_v23 = vld [vmem:[#allocation5 + $0x10] sm:$0xff] }
  0x2b   :  { %3657 = vst [vmem:[#allocation11_spill] sm:$0xff] %v2880_v4  ;;  %v2884_v9 = vpack.c.bf16 %v56_v7, %v52_v6  ;;  %v60_v12 = vld [vmem:[#allocation5 + $0x88] sm:$0xff]  ;;  %1594 = vmatprep.subr.bf16.mxu0 %v2880_v4  ;;  %v2888_v14 = vpack.c.bf16 %v55_v11, %v51_v10  ;;  %v59_v15 = vld [vmem:[#allocation5 + $0x80] sm:$0xff]  ;;  %v49_v24 = vld [vmem:[#allocation5 + $0x30] sm:$0xff] }
  0x2c   :  { %v64_v13 = vld [vmem:[#allocation5 + $0xa8] sm:$0xff]  ;;  %1596 = vmatpush1.bf16.msra.mxu0 %v2882_v8  ;;  %v63_v16 = vld [vmem:[#allocation5 + $0xa0] sm:$0xff]  ;;  %3658 = vst [vmem:[#allocation12_spill] sm:$0xff] %v2893_v22  ;;  %v2895_v25 = vpack.c.bf16 %v49_v24, %v45_v23  ;;  %1658 = vmatprep.subr.bf16.mxu1 %v2893_v22  ;;  %v54_v27 = vld [vmem:[#allocation5 + $0x58] sm:$0xff] }
  0x2d   :  { %1598 = vmatprep.subr.bf16.mxu0 %v2884_v9  ;;  %v2891_v17 = vpack.c.bf16 %v64_v13, %v60_v12  ;;  %v68_v18 = vld [vmem:[#allocation5 + $0xc8] sm:$0xff]  ;;  %v2898_v26 = vpack.c.bf16 %v63_v16, %v59_v15  ;;  %v58_v28 = vld [vmem:[#allocation5 + $0x78] sm:$0xff]  ;;  %v53_v29 = vld [vmem:[#allocation5 + $0x50] sm:$0xff] }
  0x2e   :  { %v72_v21 = vld [vmem:[#allocation5 + $0xe8] sm:$0xff]  ;;  %v67_v31 = vld [vmem:[#allocation5 + $0xc0] sm:$0xff]  ;;  %1660 = vmatpush1.bf16.msra.mxu1 %v2895_v25  ;;  %v2905_v33 = vpack.c.bf16 %v58_v28, %v54_v27  ;;  %v57_v34 = vld [vmem:[#allocation5 + $0x70] sm:$0xff] }
  0x2f   :  { %v2902_v30 = vpack.c.bf16 %v72_v21, %v68_v18  ;;  %v71_v32 = vld [vmem:[#allocation5 + $0xe0] sm:$0xff]  ;;  %v76_v35 = vld [vmem:[#allocation5 + $0x108] sm:$0xff]  ;;  %v2907_v37 = vpack.c.bf16 %v57_v34, %v53_v29  ;;  %v62_v38 = vld [vmem:[#allocation5 + $0x98] sm:$0xff] }
  0x30   :  { %1600 = vmatpush1.bf16.msra.mxu0 %v2888_v14  ;;  %v80_v36 = vld [vmem:[#allocation5 + $0x128] sm:$0xff]  ;;  %1662 = vmatprep.subr.bf16.mxu1 %v2905_v33  ;;  %v66_v39 = vld [vmem:[#allocation5 + $0xb8] sm:$0xff]  ;;  %v61_v40 = vld [vmem:[#allocation5 + $0x90] sm:$0xff]  ;;  %v2911_v42 = vpack.c.bf16 %v71_v32, %v67_v31 }
  0x31   :  { %1602 = vmatprep.subr.bf16.mxu0 %v2891_v17  ;;  %v65_v41 = vld [vmem:[#allocation5 + $0xb0] sm:$0xff]  ;;  %v75_v43 = vld [vmem:[#allocation5 + $0x100] sm:$0xff]  ;;  %v2913_v45 = vpack.c.bf16 %v66_v39, %v62_v38  ;;  %v2916_v46 = vpack.c.bf16 %v80_v36, %v76_v35  ;;  %v84_v47 = vld [vmem:[#allocation5 + $0x148] sm:$0xff] }
  0x32   :  { %v79_v44 = vld [vmem:[#allocation5 + $0x120] sm:$0xff]  ;;  %1664 = vmatpush1.bf16.msra.mxu1 %v2907_v37  ;;  %v2919_v48 = vpack.c.bf16 %v65_v41, %v61_v40  ;;  %v70_v49 = vld [vmem:[#allocation5 + $0xd8] sm:$0xff]  ;;  %v88_v51 = vld [vmem:[#allocation5 + $0x168] sm:$0xff] }
  0x33   :  { %v74_v50 = vld [vmem:[#allocation5 + $0xf8] sm:$0xff]  ;;  %1666 = vmatprep.subr.bf16.mxu1 %v2913_v45  ;;  %v69_v53 = vld [vmem:[#allocation5 + $0xd0] sm:$0xff]  ;;  %v2925_v55 = vpack.c.bf16 %v79_v44, %v75_v43  ;;  %v2928_v58 = vpack.c.bf16 %v88_v51, %v84_v47  ;;  %v83_v59 = vld [vmem:[#allocation5 + $0x140] sm:$0xff] }
  0x34   :  { %1604 = vmatpush1.bf16.msra.mxu0 %v2898_v26  ;;  %v2922_v52 = vpack.c.bf16 %v74_v50, %v70_v49  ;;  %v73_v54 = vld [vmem:[#allocation5 + $0xf0] sm:$0xff]  ;;  %v78_v56 = vld [vmem:[#allocation5 + $0x118] sm:$0xff]  ;;  %v87_v60 = vld [vmem:[#allocation5 + $0x160] sm:$0xff] }
  0x35   :  { %1606 = vmatprep.subr.bf16.mxu0 %v2902_v30  ;;  %v82_v57 = vld [vmem:[#allocation5 + $0x138] sm:$0xff]  ;;  %v92_v61 = vld [vmem:[#allocation5 + $0x188] sm:$0xff]  ;;  %v2931_v62 = vpack.c.bf16 %v73_v54, %v69_v53  ;;  %v77_v1 = vld [vmem:[#allocation5 + $0x110] sm:$0xff]  ;;  %v2937_v6 = vpack.c.bf16 %v87_v60, %v83_v59 }
  0x36   :  { %1668 = vmatpush1.bf16.msra.mxu1 %v2919_v48  ;;  %v96_v63 = vld [vmem:[#allocation5 + $0x1a8] sm:$0xff]  ;;  %v2934_v0 = vpack.c.bf16 %v82_v57, %v78_v56  ;;  %v81_v2 = vld [vmem:[#allocation5 + $0x130] sm:$0xff]  ;;  %v86_v3 = vld [vmem:[#allocation5 + $0x158] sm:$0xff] }
  0x37   :  { %1670 = vmatprep.subr.bf16.mxu1 %v2922_v52  ;;  %v90_v5 = vld [vmem:[#allocation5 + $0x178] sm:$0xff]  ;;  %v2940_v7 = vpack.c.bf16 %v96_v63, %v92_v61  ;;  %v91_v10 = vld [vmem:[#allocation5 + $0x180] sm:$0xff]  ;;  %v100_v12 = vld [vmem:[#allocation5 + $0x1c8] sm:$0xff]  ;;  %v2943_v13 = vpack.c.bf16 %v81_v2, %v77_v1 }
  0x38   :  { %1608 = vmatpush1.bf16.msra.mxu0 %v2911_v42  ;;  %v95_v11 = vld [vmem:[#allocation5 + $0x1a0] sm:$0xff]  ;;  %v104_v15 = vld [vmem:[#allocation5 + $0x1e8] sm:$0xff]  ;;  %v2946_v16 = vpack.c.bf16 %v90_v5, %v86_v3  ;;  %v85_v18 = vld [vmem:[#allocation5 + $0x150] sm:$0xff] }
  0x39   :  { %1610 = vmatprep.subr.bf16.mxu0 %v2916_v46  ;;  %v89_v19 = vld [vmem:[#allocation5 + $0x170] sm:$0xff]  ;;  %v94_v20 = vld [vmem:[#allocation5 + $0x198] sm:$0xff]  ;;  %v2949_v23 = vpack.c.bf16 %v95_v11, %v91_v10  ;;  %v2952_v24 = vpack.c.bf16 %v104_v15, %v100_v12  ;;  %v99_v27 = vld [vmem:[#allocation5 + $0x1c0] sm:$0xff] }
  0x3a   :  { %1672 = vmatpush1.bf16.msra.mxu1 %v2931_v62  ;;  %v98_v21 = vld [vmem:[#allocation5 + $0x1b8] sm:$0xff]  ;;  %v103_v28 = vld [vmem:[#allocation5 + $0x1e0] sm:$0xff]  ;;  %v108_v29 = vld [vmem:[#allocation5 + $0x208] sm:$0xff]  ;;  %v2955_v31 = vpack.c.bf16 %v89_v19, %v85_v18 }
  0x3b   :  { %1674 = vmatprep.subr.bf16.mxu1 %v2934_v0  ;;  %v112_v32 = vld [vmem:[#allocation5 + $0x228] sm:$0xff]  ;;  %v2958_v34 = vpack.c.bf16 %v98_v21, %v94_v20  ;;  %v93_v35 = vld [vmem:[#allocation5 + $0x190] sm:$0xff]  ;;  %v102_v38 = vld [vmem:[#allocation5 + $0x1d8] sm:$0xff]  ;;  %v2961_v40 = vpack.c.bf16 %v103_v28, %v99_v27 }
  0x3c   :  { %1612 = vmatpush1.bf16.msra.mxu0 %v2925_v55  ;;  %v97_v36 = vld [vmem:[#allocation5 + $0x1b0] sm:$0xff]  ;;  %v106_v39 = vld [vmem:[#allocation5 + $0x1f8] sm:$0xff]  ;;  %v2964_v41 = vpack.c.bf16 %v112_v32, %v108_v29  ;;  %v107_v43 = vld [vmem:[#allocation5 + $0x200] sm:$0xff] }
  0x3d   :  { %1614 = vmatprep.subr.bf16.mxu0 %v2928_v58  ;;  %v111_v44 = vld [vmem:[#allocation5 + $0x220] sm:$0xff]  ;;  %v116_v47 = vld [vmem:[#allocation5 + $0x248] sm:$0xff]  ;;  %v2967_v49 = vpack.c.bf16 %v97_v36, %v93_v35  ;;  %v2970_v51 = vpack.c.bf16 %v106_v39, %v102_v38  ;;  %v101_v53 = vld [vmem:[#allocation5 + $0x1d0] sm:$0xff] }
  0x3e   :  { %1676 = vmatpush1.bf16.msra.mxu1 %v2943_v13  ;;  %v120_v50 = vld [vmem:[#allocation5 + $0x268] sm:$0xff]  ;;  %v105_v54 = vld [vmem:[#allocation5 + $0x1f0] sm:$0xff]  ;;  %v110_v56 = vld [vmem:[#allocation5 + $0x218] sm:$0xff]  ;;  %v2973_v59 = vpack.c.bf16 %v111_v44, %v107_v43 }
  0x3f   :  { %1678 = vmatprep.subr.bf16.mxu1 %v2946_v16  ;;  %v114_v57 = vld [vmem:[#allocation5 + $0x238] sm:$0xff]  ;;  %v2976_v60 = vpack.c.bf16 %v120_v50, %v116_v47  ;;  %v115_v61 = vld [vmem:[#allocation5 + $0x240] sm:$0xff]  ;;  %v124_v1 = vld [vmem:[#allocation5 + $0x288] sm:$0xff]  ;;  %v2979_v2 = vpack.c.bf16 %v105_v54, %v101_v53 }
  0x40   :  { %1616 = vmatpush1.bf16.msra.mxu0 %v2937_v6  ;;  %v119_v63 = vld [vmem:[#allocation5 + $0x260] sm:$0xff]  ;;  %v128_v3 = vld [vmem:[#allocation5 + $0x2a8] sm:$0xff]  ;;  %v2982_v5 = vpack.c.bf16 %v114_v57, %v110_v56  ;;  %v109_v10 = vld [vmem:[#allocation5 + $0x210] sm:$0xff] }
  0x41   :  { %1618 = vmatprep.subr.bf16.mxu0 %v2940_v7  ;;  %v113_v11 = vld [vmem:[#allocation5 + $0x230] sm:$0xff]  ;;  %v118_v12 = vld [vmem:[#allocation5 + $0x258] sm:$0xff]  ;;  %v2985_v18 = vpack.c.bf16 %v119_v63, %v115_v61  ;;  %v2988_v19 = vpack.c.bf16 %v128_v3, %v124_v1  ;;  %v123_v20 = vld [vmem:[#allocation5 + $0x280] sm:$0xff] }
  0x42   :  { %1680 = vmatpush1.bf16.msra.mxu1 %v2955_v31  ;;  %v122_v15 = vld [vmem:[#allocation5 + $0x278] sm:$0xff]  ;;  %v127_v21 = vld [vmem:[#allocation5 + $0x2a0] sm:$0xff]  ;;  %v132_v27 = vld [vmem:[#allocation5 + $0x2c8] sm:$0xff]  ;;  %v2991_v28 = vpack.c.bf16 %v113_v11, %v109_v10 }
  0x43   :  { %1682 = vmatprep.subr.bf16.mxu1 %v2958_v34  ;;  %v136_v29 = vld [vmem:[#allocation5 + $0x2e8] sm:$0xff]  ;;  %v2994_v32 = vpack.c.bf16 %v122_v15, %v118_v12  ;;  %v117_v35 = vld [vmem:[#allocation5 + $0x250] sm:$0xff]  ;;  %v126_v38 = vld [vmem:[#allocation5 + $0x298] sm:$0xff]  ;;  %v2997_v43 = vpack.c.bf16 %v127_v21, %v123_v20 }
  0x44   :  { %1620 = vmatpush1.bf16.msra.mxu0 %v2949_v23  ;;  %v121_v36 = vld [vmem:[#allocation5 + $0x270] sm:$0xff]  ;;  %v130_v39 = vld [vmem:[#allocation5 + $0x2b8] sm:$0xff]  ;;  %v3000_v44 = vpack.c.bf16 %v136_v29, %v132_v27  ;;  %v131_v47 = vld [vmem:[#allocation5 + $0x2c0] sm:$0xff] }
  0x45   :  { %1622 = vmatprep.subr.bf16.mxu0 %v2952_v24  ;;  %v135_v50 = vld [vmem:[#allocation5 + $0x2e0] sm:$0xff]  ;;  %v140_v53 = vld [vmem:[#allocation5 + $0x308] sm:$0xff]  ;;  %v3003_v54 = vpack.c.bf16 %v121_v36, %v117_v35  ;;  %v3006_v57 = vpack.c.bf16 %v130_v39, %v126_v38  ;;  %v125_v61 = vld [vmem:[#allocation5 + $0x290] sm:$0xff] }
  0x46   :  { %1684 = vmatpush1.bf16.msra.mxu1 %v2967_v49  ;;  %v144_v56 = vld [vmem:[#allocation5 + $0x328] sm:$0xff]  ;;  %v129_v63 = vld [vmem:[#allocation5 + $0x2b0] sm:$0xff]  ;;  %v134_v1 = vld [vmem:[#allocation5 + $0x2d8] sm:$0xff]  ;;  %v3009_v10 = vpack.c.bf16 %v135_v50, %v131_v47 }
  0x47   :  { %1686 = vmatprep.subr.bf16.mxu1 %v2970_v51  ;;  %3659 = vst [vmem:[#allocation13_spill] sm:$0xff] %v3006_v57  ;;  %v138_v3 = vld [vmem:[#allocation5 + $0x2f8] sm:$0xff]  ;;  %v3012_v11 = vpack.c.bf16 %v144_v56, %v140_v53  ;;  %v139_v12 = vld [vmem:[#allocation5 + $0x300] sm:$0xff]  ;;  %v148_v20 = vld [vmem:[#allocation5 + $0x348] sm:$0xff]  ;;  %v3015_v21 = vpack.c.bf16 %v129_v63, %v125_v61 }
  0x48   :  { %1624 = vmatpush1.bf16.msra.mxu0 %v2961_v40  ;;  %3660 = vst [vmem:[#allocation14_spill] sm:$0xff] %v3009_v10  ;;  %v143_v15 = vld [vmem:[#allocation5 + $0x320] sm:$0xff]  ;;  %v152_v27 = vld [vmem:[#allocation5 + $0x368] sm:$0xff]  ;;  %v3018_v29 = vpack.c.bf16 %v138_v3, %v134_v1  ;;  %v133_v35 = vld [vmem:[#allocation5 + $0x2d0] sm:$0xff] }
  0x49   :  { %1626 = vmatprep.subr.bf16.mxu0 %v2964_v41  ;;  %3661 = vst [vmem:[#allocation15_spill] sm:$0xff] %v3012_v11  ;;  %3662 = vst [vmem:[#allocation16_spill] sm:$0xff] %v3015_v21  ;;  %v137_v36 = vld [vmem:[#allocation5 + $0x2f0] sm:$0xff]  ;;  %v142_v38 = vld [vmem:[#allocation5 + $0x318] sm:$0xff]  ;;  %v3021_v47 = vpack.c.bf16 %v143_v15, %v139_v12  ;;  %v3024_v50 = vpack.c.bf16 %v152_v27, %v148_v20 }
  0x4a   :  { %1688 = vmatpush1.bf16.msra.mxu1 %v2979_v2  ;;  %3663 = vst [vmem:[#allocation17_spill] sm:$0xff] %v3018_v29  ;;  %v146_v39 = vld [vmem:[#allocation5 + $0x338] sm:$0xff]  ;;  %v147_v53 = vld [vmem:[#allocation5 + $0x340] sm:$0xff]  ;;  %v156_v61 = vld [vmem:[#allocation5 + $0x388] sm:$0xff]  ;;  %v3027_v63 = vpack.c.bf16 %v137_v36, %v133_v35 }
  0x4b   :  { %1690 = vmatprep.subr.bf16.mxu1 %v2982_v5  ;;  %3664 = vst [vmem:[#allocation18_spill] sm:$0xff] %v3021_v47  ;;  %3665 = vst [vmem:[#allocation19_spill] sm:$0xff] %v3024_v50  ;;  %v151_v56 = vld [vmem:[#allocation5 + $0x360] sm:$0xff]  ;;  %v160_v1 = vld [vmem:[#allocation5 + $0x3a8] sm:$0xff]  ;;  %v3030_v3 = vpack.c.bf16 %v146_v39, %v142_v38 }
  0x4c   :  { %1628 = vmatpush1.bf16.msra.mxu0 %v2973_v59  ;;  %3666 = vst [vmem:[#allocation20_spill] sm:$0xff] %v3027_v63  ;;  %v150_v12 = vld [vmem:[#allocation5 + $0x358] sm:$0xff]  ;;  %v3033_v20 = vpack.c.bf16 %v151_v56, %v147_v53  ;;  %v3036_v27 = vpack.c.bf16 %v160_v1, %v156_v61  ;;  %v159_v35 = vld [vmem:[#allocation5 + $0x3a0] sm:$0xff]  ;;  %v164_v36 = vld [vmem:[#allocation5 + $0x3c8] sm:$0xff] }
  0x4d   :  { %1630 = vmatprep.subr.bf16.mxu0 %v2976_v60  ;;  %3667 = vst [vmem:[#allocation21_spill] sm:$0xff] %v3030_v3  ;;  %v154_v15 = vld [vmem:[#allocation5 + $0x378] sm:$0xff]  ;;  %v168_v38 = vld [vmem:[#allocation5 + $0x3e8] sm:$0xff] }
  0x4e   :  { %1692 = vmatpush1.bf16.msra.mxu1 %v2991_v28  ;;  %3668 = vst [vmem:[#allocation22_spill] sm:$0xff] %v3033_v20  ;;  %3669 = vst [vmem:[#allocation23_spill] sm:$0xff] %v3036_v27  ;;  %v3042_v39 = vpack.c.bf16 %v154_v15, %v150_v12  ;;  %v158_v53 = vld [vmem:[#allocation5 + $0x398] sm:$0xff]  ;;  %v3048_v1 = vpack.c.bf16 %v168_v38, %v164_v36  ;;  %v157_v15 = vld [vmem:[#allocation5 + $0x390] sm:$0xff] }
  0x4f   :  { %1694 = vmatprep.subr.bf16.mxu1 %v2994_v32  ;;  %v162_v56 = vld [vmem:[#allocation5 + $0x3b8] sm:$0xff]  ;;  %v169_v36 = vld [vmem:[#allocation5 + $0x3f0] sm:$0xff]  ;;  %v193_v38 = vld [vmem:[#allocation2] sm:$0xff] }
  0x50   :  { %1632 = vmatpush1.bf16.msra.mxu0 %v2985_v18  ;;  %3671 = vst [vmem:[#allocation25_spill] sm:$0xff] %v3042_v39  ;;  %3673 = vst [vmem:[#allocation27_spill] sm:$0xff] %v3048_v1  ;;  %v3054_v12 = vpack.c.bf16 %v162_v56, %v158_v53 }
  0x51   :  { %1634 = vmatprep.subr.bf16.mxu0 %v2988_v19  ;;  %v3684_v56 = vld [vmem:[#allocation17_spill] sm:$0xff] }
  0x52   :  { %1696 = vmatpush1.bf16.msra.mxu1 %v3003_v54  ;;  %3675 = vst [vmem:[#allocation29_spill] sm:$0xff] %v3054_v12 }
  0x53   :  { %1698 = vmatprep.subr.bf16.mxu1 %v3006_v57  ;;  %v141_v57 = vld [vmem:[#allocation5 + $0x310] sm:$0xff] }
  0x54   :  { %1636 = vmatpush1.bf16.msra.mxu0 %v2997_v43 }
  0x55   :  { %1638 = vmatprep.subr.bf16.mxu0 %v3000_v44 }
  0x56   :  { %1700 = vmatpush1.bf16.msra.mxu1 %v3015_v21  ;;  %v155_v21 = vld [vmem:[#allocation5 + $0x380] sm:$0xff] }
  0x57   :  { %1702 = vmatprep.subr.bf16.mxu1 %v3018_v29  ;;  %v3045_v61 = vpack.c.bf16 %v159_v35, %v155_v21 }
  0x58   :  { %1640 = vmatpush1.bf16.msra.mxu0 %v3009_v10  ;;  %v145_v10 = vld [vmem:[#allocation5 + $0x330] sm:$0xff] }
  0x59   :  { %1642 = vmatprep.subr.bf16.mxu0 %v3012_v11  ;;  %v3039_v29 = vpack.c.bf16 %v145_v10, %v141_v57  ;;  %v149_v11 = vld [vmem:[#allocation5 + $0x350] sm:$0xff]  ;;  %3672 = vst [vmem:[#allocation26_spill] sm:$0xff] %v3045_v61  ;;  %v167_v57 = vld [vmem:[#allocation5 + $0x3e0] sm:$0xff] }
  0x5a   :  { %1704 = vmatpush1.bf16.msra.mxu1 %v3027_v63  ;;  %v163_v63 = vld [vmem:[#allocation5 + $0x3c0] sm:$0xff] }
  0x5b   :  { %3670 = vst [vmem:[#allocation24_spill] sm:$0xff] %v3039_v29  ;;  %1706 = vmatprep.subr.bf16.mxu1 %v3030_v3  ;;  %v161_v3 = vld [vmem:[#allocation5 + $0x3b0] sm:$0xff]  ;;  %v3057_v21 = vpack.c.bf16 %v167_v57, %v163_v63  ;;  %v3681_v63 = vld [vmem:[#allocation14_spill] sm:$0xff] }
  0x5c   :  { %1644 = vmatpush1.bf16.msra.mxu0 %v3021_v47  ;;  %v153_v47 = vld [vmem:[#allocation5 + $0x370] sm:$0xff]  ;;  %v3061_v35 = vpack.c.bf16 %v161_v3, %v157_v15  ;;  %v3682_v3 = vld [vmem:[#allocation15_spill] sm:$0xff]  ;;  %v3685_v57 = vld [vmem:[#allocation18_spill] sm:$0xff] }
  0x5d   :  { %1646 = vmatprep.subr.bf16.mxu0 %v3024_v50  ;;  %v3051_v10 = vpack.c.bf16 %v153_v47, %v149_v11  ;;  %v166_v50 = vld [vmem:[#allocation5 + $0x3d8] sm:$0xff]  ;;  %3676 = vst [vmem:[#allocation30_spill] sm:$0xff] %v3057_v21  ;;  %v165_v47 = vld [vmem:[#allocation5 + $0x3d0] sm:$0xff]  ;;  %v3686_v15 = vld [vmem:[#allocation19_spill] sm:$0xff] }
  0x5e   :  { %1708 = vmatpush1.bf16.msra.mxu1 %v3039_v29  ;;  %3677 = vst [vmem:[#allocation31_spill] sm:$0xff] %v3061_v35  ;;  %v3068_v53 = vpack.c.bf16 %v169_v36, %v165_v47  ;;  %v3687_v47 = vld [vmem:[#allocation20_spill] sm:$0xff]  ;;  %v3688_v36 = vld [vmem:[#allocation21_spill] sm:$0xff] }
  0x5f   :  { %3674 = vst [vmem:[#allocation28_spill] sm:$0xff] %v3051_v10  ;;  %1710 = vmatprep.subr.bf16.mxu1 %v3042_v39 }
  0x60   :  { %1648 = vmatpush1.bf16.msra.mxu0 %v3033_v20  ;;  %v170_v20 = vld [vmem:[#allocation5 + $0x3f8] sm:$0xff]  ;;  %3679 = vst [vmem:[#allocation33_spill] sm:$0xff] %v3068_v53 }
  0x61   :  { %1650 = vmatprep.subr.bf16.mxu0 %v3036_v27  ;;  %v3064_v11 = vpack.c.bf16 %v170_v20, %v166_v50  ;;  %v3680_v50 = vld [vmem:[#allocation13_spill] sm:$0xff]  ;;  %v3683_v20 = vld [vmem:[#allocation16_spill] sm:$0xff] }
  0x62   :  { %1712 = vmatpush1.bf16.msra.mxu1 %v3051_v10 }
  0x63   :  { %1714 = vmatprep.subr.bf16.mxu1 %v3054_v12  ;;  %3678 = vst [vmem:[#allocation32_spill] sm:$0xff] %v3064_v11 }
  0x64   :  { %1652 = vmatpush1.bf16.msra.mxu0 %v3045_v61 }
  0x65   :  { %1654 = vmatprep.subr.bf16.mxu0 %v3048_v1 }
  0x66   :  { %1716 = vmatpush1.bf16.msra.mxu1 %v3061_v35 }
  0x67   :  { %1718 = vmatprep.subr.bf16.mxu1 %v3064_v11 }
  0x68   :  { %1656 = vmatpush1.bf16.msra.mxu0 %v3057_v21 }
  0x69   :  { %1722 = vmatprep.subr.bf16.mxu0 %v2880_v4 }
  0x6a   :  { %1720 = vmatpush1.bf16.msra.mxu1 %v3068_v53 }
  0x6b   :  { %259 = vmatmul.mubr.f32.vlgmr.msra.gmra.mrb[0].mxu0 %v193_v38  ;;  %1786 = vmatprep.subr.bf16.mxu1 %v2893_v22 }
  0x6c   :  { %1724 = vmatpush1.bf16.msra.mxu0 %v2882_v8 }
  0x6d   :  { %1726 = vmatprep.subr.bf16.mxu0 %v2884_v9  ;;  %330 = vmatmul.mubr.f32.vlgmr.msra.gmra.mrb[0].mxu1 %v193_v38  ;;  %v3689_v38 = vld [vmem:[#allocation22_spill] sm:$0xff] }
  0x6e   :  { %1788 = vmatpush1.bf16.msra.mxu1 %v2895_v25 }
  0x6f   :  { %1790 = vmatprep.subr.bf16.mxu1 %v2905_v33 }
  0x70   :  { %1728 = vmatpush1.bf16.msra.mxu0 %v2888_v14 }
  0x71   :  { %1730 = vmatprep.subr.bf16.mxu0 %v2891_v17 }
  0x72   :  { %1792 = vmatpush1.bf16.msra.mxu1 %v2907_v37 }
  0x73   :  { %1794 = vmatprep.subr.bf16.mxu1 %v2913_v45 }
  0x74   :  { %1732 = vmatpush1.bf16.msra.mxu0 %v2898_v26 }
  0x75   :  { %1734 = vmatprep.subr.bf16.mxu0 %v2902_v30 }
  0x76   :  { %1796 = vmatpush1.bf16.msra.mxu1 %v2919_v48 }
  0x77   :  { %1798 = vmatprep.subr.bf16.mxu1 %v2922_v52 }
  0x78   :  { %1736 = vmatpush1.bf16.msra.mxu0 %v2911_v42 }
  0x79   :  { %1738 = vmatprep.subr.bf16.mxu0 %v2916_v46 }
  0x7a   :  { %1800 = vmatpush1.bf16.msra.mxu1 %v2931_v62 }
  0x7b   :  { %1802 = vmatprep.subr.bf16.mxu1 %v2934_v0 }
  0x7c   :  { %1740 = vmatpush1.bf16.msra.mxu0 %v2925_v55 }
  0x7d   :  { %1742 = vmatprep.subr.bf16.mxu0 %v2928_v58 }
  0x7e   :  { %1804 = vmatpush1.bf16.msra.mxu1 %v2943_v13 }
  0x7f   :  { %1806 = vmatprep.subr.bf16.mxu1 %v2946_v16 }
  0x80   :  { %1744 = vmatpush1.bf16.msra.mxu0 %v2937_v6 }
  0x81   :  { %1746 = vmatprep.subr.bf16.mxu0 %v2940_v7 }
  0x82   :  { %1808 = vmatpush1.bf16.msra.mxu1 %v2955_v31 }
  0x83   :  { %1810 = vmatprep.subr.bf16.mxu1 %v2958_v34 }
  0x84   :  { %1748 = vmatpush1.bf16.msra.mxu0 %v2949_v23 }
  0x85   :  { %1750 = vmatprep.subr.bf16.mxu0 %v2952_v24 }
  0x86   :  { %1812 = vmatpush1.bf16.msra.mxu1 %v2967_v49 }
  0x87   :  { %1814 = vmatprep.subr.bf16.mxu1 %v2970_v51 }
  0x88   :  { %1752 = vmatpush1.bf16.msra.mxu0 %v2961_v40 }
  0x89   :  { %1754 = vmatprep.subr.bf16.mxu0 %v2964_v41 }
  0x8a   :  { %1816 = vmatpush1.bf16.msra.mxu1 %v2979_v2 }
  0x8b   :  { %1818 = vmatprep.subr.bf16.mxu1 %v2982_v5 }
  0x8c   :  { %1756 = vmatpush1.bf16.msra.mxu0 %v2973_v59 }
  0x8d   :  { %1758 = vmatprep.subr.bf16.mxu0 %v2976_v60 }
  0x8e   :  { %1820 = vmatpush1.bf16.msra.mxu1 %v2991_v28 }
  0x8f   :  { %1822 = vmatprep.subr.bf16.mxu1 %v2994_v32 }
  0x90   :  { %1760 = vmatpush1.bf16.msra.mxu0 %v2985_v18 }
  0x91   :  { %1762 = vmatprep.subr.bf16.mxu0 %v2988_v19 }
  0x92   :  { %1824 = vmatpush1.bf16.msra.mxu1 %v3003_v54 }
  0x93   :  { %1826 = vmatprep.subr.bf16.mxu1 %v3680_v50 }
  0x94   :  { %1764 = vmatpush1.bf16.msra.mxu0 %v2997_v43 }
  0x95   :  { %1766 = vmatprep.subr.bf16.mxu0 %v3000_v44 }
  0x96   :  { %1828 = vmatpush1.bf16.msra.mxu1 %v3683_v20 }
  0x97   :  { %1830 = vmatprep.subr.bf16.mxu1 %v3684_v56 }
  0x98   :  { %1768 = vmatpush1.bf16.msra.mxu0 %v3681_v63 }
  0x99   :  { %1770 = vmatprep.subr.bf16.mxu0 %v3682_v3 }
  0x9a   :  { %1832 = vmatpush1.bf16.msra.mxu1 %v3687_v47 }
  0x9b   :  { %1834 = vmatprep.subr.bf16.mxu1 %v3688_v36 }
  0x9c   :  { %1772 = vmatpush1.bf16.msra.mxu0 %v3685_v57 }
  0x9d   :  { %1774 = vmatprep.subr.bf16.mxu0 %v3686_v15 }
  0x9e   :  { %1836 = vmatpush1.bf16.msra.mxu1 %v3039_v29 }
  0x9f   :  { %1838 = vmatprep.subr.bf16.mxu1 %v3042_v39 }
  0xa0   :  { %1776 = vmatpush1.bf16.msra.mxu0 %v3689_v38 }
  0xa1   :  { %1778 = vmatprep.subr.bf16.mxu0 %v3036_v27  ;;  %v173_v27 = vlaneseq }
  0xa2   :  { %1840 = vmatpush1.bf16.msra.mxu1 %v3051_v10 }
  0xa3   :  { %1842 = vmatprep.subr.bf16.mxu1 %v3054_v12 }
  0xa4   :  { %1780 = vmatpush1.bf16.msra.mxu0 %v3045_v61  ;;  %v174_v61 = vshrl.u32 %v173_v27, 7 }
  0xa5   :  { %1782 = vmatprep.subr.bf16.mxu0 %v3048_v1  ;;  %v171_v1 = vld [vmem:[%s3604_s2] sm:$0xf]  ;;  %s2832_s2 = smov [#allocation7]  }
  0xa6   :  { %1844 = vmatpush1.bf16.msra.mxu1 %v3061_v35  ;;  %v175_v38 = vsub.s32 0, %v174_v61  ;;  %v179_v12 = vsub.s32 1, %v174_v61  ;;  %v187_v35 = vsub.s32 3, %v174_v61  ;;  %v183_v29 = vsub.s32 2, %v174_v61  ;;  %s1556_s13 = sshll.u32 %s2832_s2, 4  ;;  %s1557_s13 = int_to_ptr.vmem [resolvable:$true] %s1556_s13 }
  0xa7   :  { %1846 = vmatprep.subr.bf16.mxu1 %v3064_v11  ;;  %s2797_s14 = scalar_lea.vmem %s1557_s13, 1024  ;;  %p2802_p3 = scmp.lt.s32.totalorder %s1557_s13, %s1557_s13 }
  0xa8   :  { %1784 = vmatpush1.bf16.msra.mxu0 %v3057_v21  ;;  %v3141_v10 = vrot.slane %v171_v1, %v175_v38  ;;  %v3143_v21 = vrot.slane %v171_v1, %v179_v12  ;;  %v3147_v15 = vrot.slane %v171_v1, %v187_v35  ;;  %v3150_v12 = vrot.slane %v171_v1, %v183_v29  ;;  %p2798_p2 = scmp.ne.s32.totalorder %s1557_s13, %s2797_s14  ;;  %p2803_p4 = scmp.lt.s32.totalorder %s2797_s14, %s2797_s14 }
  0xa9   :  { %1850 = vmatprep.subr.bf16.mxu0 %v2880_v4 }
  0xaa   :  { %1848 = vmatpush1.bf16.msra.mxu1 %v3068_v53  ;;  %3690 = vst [vmem:[#allocation13_spill] sm:$0xff] %v3141_v10  ;;  %3691 = vst [vmem:[#allocation16_spill] sm:$0xff] %v3143_v21  ;;  %p2804_p5 = por %p2803_p4, %p2802_p3 }
  0xab   :  { %1914 = vmatprep.subr.bf16.mxu1 %v2893_v22 }
  0xac   :  { %p2805_p6 = pnand %p2804_p5, %p2798_p2 }
 0x13e   :  { %v260_v4 = vpop.f32.mrb[0].mxu0 }
 0x13f   :  { %v261_v11 = vadd.f32 %v260_v4, %v3141_v10  ;;  %v262_v39 = vpop.f32.mrb[1].mxu0 }
 0x140   :  { %v263_v53 = vadd.f32 %v262_v39, %v3143_v21  ;;  %v331_v57 = vpop.f32.mrb[0].mxu1 }
 0x141   :  { %v1569_v22 = vmul.f32 -1.442695, %v261_v11  ;;  %v333_v36 = vpop.f32.mrb[1].mxu1  ;;  %v332_v47 = vadd.f32 %v331_v57, %v3150_v12 }
 0x142   :  { %v1570_v27 = vmul.f32 -1.442695, %v263_v53  ;;  %v334_v38 = vadd.f32 %v333_v36, %v3147_v15 }
 0x143   :  { %2625 = vpow2.f32 %v1569_v22 }
 0x144   :  { %2627 = vpow2.f32 %v1570_v27  ;;  %v1571_v3 = vmul.f32 -1.442695, %v334_v38  ;;  %v362_v38 = vld [vmem:[#allocation2 + $0x8] sm:$0xff] }
 0x146   :  { %2629 = vpow2.f32 %v1571_v3 }
 0x147   :  { %2631 = vtanh.f32 %v332_v47  ;;  %v3694_v47 = vld [vmem:[#allocation21_spill] sm:$0xff] }
 0x14d   :  { %v2626_v4 = vpop.eup %2625 }
 0x14e   :  { %v2628_v10 = vpop.eup %2627  ;;  %v339_v39 = vadd.f32 1.0, %v2626_v4  ;;  %v3695_v4 = vld [vmem:[#allocation18_spill] sm:$0xff] }
 0x14f   :  { %v345_v35 = vadd.f32 1.0, %v2628_v10  ;;  %v3692_v10 = vld [vmem:[#allocation20_spill] sm:$0xff] }
 0x150   :  { %2633 = vrcp.f32 %v339_v39  ;;  %v2630_v61 = vpop.eup %2629  ;;  %v3696_v39 = vld [vmem:[#allocation24_spill] sm:$0xff] }
 0x151   :  { %2635 = vrcp.f32 %v345_v35  ;;  %v2632_v22 = vpop.eup %2631  ;;  %v352_v53 = vadd.f32 1.0, %v2630_v61  ;;  %v3697_v35 = vld [vmem:[#allocation19_spill] sm:$0xff]  ;;  %v3698_v61 = vld [vmem:[#allocation25_spill] sm:$0xff] }
 0x153   :  { %2637 = vrcp.f32 %v352_v53  ;;  %v3701_v53 = vld [vmem:[#allocation23_spill] sm:$0xff] }
 0x15a   :  { %v2634_v11 = vpop.eup %2633 }
 0x15b   :  { %v2636_v27 = vpop.eup %2635  ;;  %v356_v21 = vmul.f32 %v2634_v11, %v2632_v22  ;;  %v3699_v22 = vld [vmem:[#allocation22_spill] sm:$0xff]  ;;  %v3700_v11 = vld [vmem:[#allocation28_spill] sm:$0xff] }
 0x15c   :  { %v355_v36 = vmul.f32 0.0, %v2636_v27  ;;  %v3702_v27 = vld [vmem:[#allocation29_spill] sm:$0xff] }
 0x15d   :  { %v2638_v1 = vpop.eup %2637 }
 0x15e   :  { %v3153_v29 = vadd.f32 %v356_v21, %v355_v36  ;;  %v3693_v21 = vld [vmem:[#allocation15_spill] sm:$0xff]  ;;  %v3703_v36 = vld [vmem:[#allocation26_spill] sm:$0xff] }
 0x160   :  { %2639 = vtanh.f32 %v3153_v29 }
 0x16a   :  { %v2640_v3 = vpop.eup %2639 }
 0x16b   :  { %v359_v57 = vmul.f32 %v2640_v3, %v2638_v1  ;;  %v3704_v1 = vld [vmem:[#allocation31_spill] sm:$0xff] }
 0x16c   :  { %v3705_v3 = vld [vmem:[#allocation27_spill] sm:$0xff] }
 0x16d   :  { %360 = vst [vmem:[#allocation7] sm:$0xff] %v359_v57  ;;  %427 = vmatprep.mubr.f32.mxu0 %v359_v57  ;;  %498 = vmatprep.mubr.f32.mxu1 %v359_v57  ;;  %v3706_v57 = vld [vmem:[#allocation32_spill] sm:$0xff] }
 0x16e   :  { %428 = vmatmul.mubr.f32.vlgmr.msra.gmra.mrb[2].mxu0 %v362_v38  ;;  %499 = vmatmul.mubr.f32.vlgmr.msra.gmra.mrb[2].mxu1 %v362_v38  ;;  %v3707_v38 = vld [vmem:[#allocation30_spill] sm:$0xff] }
 0x16f   :  { %1852 = vmatpush1.bf16.msra.mxu0 %v2882_v8  ;;  %1916 = vmatpush1.bf16.msra.mxu1 %v2895_v25 }
 0x170   :  { %1854 = vmatprep.subr.bf16.mxu0 %v2884_v9  ;;  %1918 = vmatprep.subr.bf16.mxu1 %v2905_v33 }
 0x173   :  { %1856 = vmatpush1.bf16.msra.mxu0 %v2888_v14  ;;  %1920 = vmatpush1.bf16.msra.mxu1 %v2907_v37 }
 0x174   :  { %1858 = vmatprep.subr.bf16.mxu0 %v2891_v17  ;;  %1922 = vmatprep.subr.bf16.mxu1 %v2913_v45 }
 0x177   :  { %1860 = vmatpush1.bf16.msra.mxu0 %v2898_v26  ;;  %1924 = vmatpush1.bf16.msra.mxu1 %v2919_v48 }
 0x178   :  { %1862 = vmatprep.subr.bf16.mxu0 %v2902_v30  ;;  %1926 = vmatprep.subr.bf16.mxu1 %v2922_v52 }
 0x17b   :  { %1864 = vmatpush1.bf16.msra.mxu0 %v2911_v42  ;;  %1928 = vmatpush1.bf16.msra.mxu1 %v2931_v62 }
 0x17c   :  { %1866 = vmatprep.subr.bf16.mxu0 %v2916_v46  ;;  %1930 = vmatprep.subr.bf16.mxu1 %v2934_v0 }
 0x17f   :  { %1868 = vmatpush1.bf16.msra.mxu0 %v2925_v55  ;;  %1932 = vmatpush1.bf16.msra.mxu1 %v2943_v13 }
 0x180   :  { %1870 = vmatprep.subr.bf16.mxu0 %v2928_v58  ;;  %1934 = vmatprep.subr.bf16.mxu1 %v2946_v16 }
 0x183   :  { %1872 = vmatpush1.bf16.msra.mxu0 %v2937_v6  ;;  %1936 = vmatpush1.bf16.msra.mxu1 %v2955_v31 }
 0x184   :  { %1874 = vmatprep.subr.bf16.mxu0 %v2940_v7  ;;  %1938 = vmatprep.subr.bf16.mxu1 %v2958_v34 }
 0x187   :  { %1876 = vmatpush1.bf16.msra.mxu0 %v2949_v23  ;;  %1940 = vmatpush1.bf16.msra.mxu1 %v2967_v49 }
 0x188   :  { %1878 = vmatprep.subr.bf16.mxu0 %v2952_v24  ;;  %1942 = vmatprep.subr.bf16.mxu1 %v2970_v51 }
 0x18b   :  { %1880 = vmatpush1.bf16.msra.mxu0 %v2961_v40  ;;  %1944 = vmatpush1.bf16.msra.mxu1 %v2979_v2 }
 0x18c   :  { %1882 = vmatprep.subr.bf16.mxu0 %v2964_v41  ;;  %1946 = vmatprep.subr.bf16.mxu1 %v2982_v5 }
 0x18f   :  { %1884 = vmatpush1.bf16.msra.mxu0 %v2973_v59  ;;  %1948 = vmatpush1.bf16.msra.mxu1 %v2991_v28 }
 0x190   :  { %1886 = vmatprep.subr.bf16.mxu0 %v2976_v60  ;;  %1950 = vmatprep.subr.bf16.mxu1 %v2994_v32 }
 0x193   :  { %1888 = vmatpush1.bf16.msra.mxu0 %v2985_v18  ;;  %1952 = vmatpush1.bf16.msra.mxu1 %v3003_v54 }
 0x194   :  { %1890 = vmatprep.subr.bf16.mxu0 %v2988_v19  ;;  %1954 = vmatprep.subr.bf16.mxu1 %v3680_v50 }
 0x197   :  { %1892 = vmatpush1.bf16.msra.mxu0 %v2997_v43  ;;  %1956 = vmatpush1.bf16.msra.mxu1 %v3683_v20 }
 0x198   :  { %1894 = vmatprep.subr.bf16.mxu0 %v3000_v44  ;;  %1958 = vmatprep.subr.bf16.mxu1 %v3684_v56 }
 0x19b   :  { %1896 = vmatpush1.bf16.msra.mxu0 %v3681_v63  ;;  %1960 = vmatpush1.bf16.msra.mxu1 %v3692_v10 }
 0x19c   :  { %1898 = vmatprep.subr.bf16.mxu0 %v3693_v21  ;;  %1962 = vmatprep.subr.bf16.mxu1 %v3694_v47  ;;  %v3712_v47 = vld [vmem:[#allocation16_spill] sm:$0xff] }
 0x19f   :  { %1900 = vmatpush1.bf16.msra.mxu0 %v3695_v4  ;;  %1964 = vmatpush1.bf16.msra.mxu1 %v3696_v39  ;;  %v3711_v39 = vld [vmem:[#allocation13_spill] sm:$0xff] }
 0x1a0   :  { %1902 = vmatprep.subr.bf16.mxu0 %v3697_v35  ;;  %1966 = vmatprep.subr.bf16.mxu1 %v3698_v61  ;;  %v3708_v35 = vld [vmem:[#allocation33_spill] sm:$0xff]  ;;  %v3709_v61 = vld [vmem:[#allocation11_spill] sm:$0xff] }
 0x1a3   :  { %1904 = vmatpush1.bf16.msra.mxu0 %v3699_v22  ;;  %1968 = vmatpush1.bf16.msra.mxu1 %v3700_v11  ;;  %v3710_v22 = vld [vmem:[#allocation12_spill] sm:$0xff] }
 0x1a4   :  { %1906 = vmatprep.subr.bf16.mxu0 %v3701_v53  ;;  %1970 = vmatprep.subr.bf16.mxu1 %v3702_v27 }
 0x1a7   :  { %1908 = vmatpush1.bf16.msra.mxu0 %v3703_v36  ;;  %1972 = vmatpush1.bf16.msra.mxu1 %v3704_v1 }
 0x1a8   :  { %1910 = vmatprep.subr.bf16.mxu0 %v3705_v3  ;;  %1974 = vmatprep.subr.bf16.mxu1 %v3706_v57 }
 0x1ab   :  { %1912 = vmatpush1.bf16.msra.mxu0 %v3707_v38  ;;  %1976 = vmatpush1.bf16.msra.mxu1 %v3708_v35 }
 0x1ac   :  { %1978 = vmatprep.subr.bf16.mxu0 %v3709_v61  ;;  %2042 = vmatprep.subr.bf16.mxu1 %v3710_v22 }
 0x241   :  { %v429_v11 = vpop.f32.mrb[2].mxu0  ;;  %v500_v53 = vpop.f32.mrb[2].mxu1 }
 0x242   :  { %v430_v27 = vadd.f32 %v429_v11, %v3711_v39  ;;  %v431_v4 = vpop.f32.mrb[3].mxu0  ;;  %v502_v36 = vpop.f32.mrb[3].mxu1  ;;  %v501_v35 = vadd.f32 %v500_v53, %v3150_v12 }
 0x243   :  { %v432_v1 = vadd.f32 %v431_v4, %v3712_v47  ;;  %v503_v38 = vadd.f32 %v502_v36, %v3147_v15 }
 0x244   :  { %v1572_v21 = vmul.f32 -1.442695, %v430_v27 }
 0x245   :  { %v1573_v3 = vmul.f32 -1.442695, %v432_v1  ;;  %v1574_v57 = vmul.f32 -1.442695, %v503_v38  ;;  %v3718_v38 = vld [vmem:[#allocation24_spill] sm:$0xff] }
 0x246   :  { %2641 = vpow2.f32 %v1572_v21 }
 0x247   :  { %2643 = vpow2.f32 %v1573_v3 }
 0x248   :  { %2645 = vpow2.f32 %v1574_v57 }
 0x249   :  { %2647 = vtanh.f32 %v501_v35  ;;  %v532_v35 = vld [vmem:[#allocation2 + $0x10] sm:$0xff] }
 0x250   :  { %v2642_v61 = vpop.eup %2641 }
 0x251   :  { %v2644_v22 = vpop.eup %2643  ;;  %v508_v10 = vadd.f32 1.0, %v2642_v61 }
 0x252   :  { %v514_v63 = vadd.f32 1.0, %v2644_v22  ;;  %v2646_v11 = vpop.eup %2645  ;;  %v3717_v22 = vld [vmem:[#allocation18_spill] sm:$0xff] }
 0x253   :  { %2649 = vrcp.f32 %v508_v10  ;;  %v2648_v39 = vpop.eup %2647  ;;  %v521_v27 = vadd.f32 1.0, %v2646_v11  ;;  %v3715_v10 = vld [vmem:[#allocation15_spill] sm:$0xff] }
 0x254   :  { %2651 = vrcp.f32 %v514_v63  ;;  %v3713_v63 = vld [vmem:[#allocation14_spill] sm:$0xff]  ;;  %v3719_v11 = vld [vmem:[#allocation19_spill] sm:$0xff] }
 0x255   :  { %2653 = vrcp.f32 %v521_v27  ;;  %v3721_v27 = vld [vmem:[#allocation22_spill] sm:$0xff] }
 0x25d   :  { %v2650_v4 = vpop.eup %2649 }
 0x25e   :  { %v2652_v1 = vpop.eup %2651  ;;  %v525_v21 = vmul.f32 %v2650_v4, %v2648_v39  ;;  %v3716_v39 = vld [vmem:[#allocation21_spill] sm:$0xff] }
 0x25f   :  { %v524_v3 = vmul.f32 %v2652_v1, %v3153_v29  ;;  %v2654_v53 = vpop.eup %2653  ;;  %v3714_v29 = vld [vmem:[#allocation20_spill] sm:$0xff]  ;;  %v3720_v4 = vld [vmem:[#allocation25_spill] sm:$0xff] }
 0x260   :  { %v3722_v1 = vld [vmem:[#allocation28_spill] sm:$0xff] }
 0x261   :  { %v3225_v36 = vadd.f32 %v525_v21, %v524_v3  ;;  %v3723_v21 = vld [vmem:[#allocation23_spill] sm:$0xff]  ;;  %v3724_v3 = vld [vmem:[#allocation29_spill] sm:$0xff] }
 0x263   :  { %2655 = vtanh.f32 %v3225_v36 }
 0x26d   :  { %v2656_v57 = vpop.eup %2655 }
 0x26e   :  { %v528_v61 = vmul.f32 %v2656_v57, %v2654_v53  ;;  %v3725_v53 = vld [vmem:[#allocation26_spill] sm:$0xff]  ;;  %v3726_v57 = vld [vmem:[#allocation31_spill] sm:$0xff] }
 0x270   :  { %530 = vst [vmem:[#allocation7 + $0x8] sm:$0xff] %v528_v61  ;;  %597 = vmatprep.mubr.f32.mxu0 %v528_v61  ;;  %668 = vmatprep.mubr.f32.mxu1 %v528_v61  ;;  %v3727_v61 = vld [vmem:[#allocation27_spill] sm:$0xff] }
 0x271   :  { %598 = vmatmul.mubr.f32.vlgmr.msra.gmra.mrb[4].mxu0 %v532_v35  ;;  %669 = vmatmul.mubr.f32.vlgmr.msra.gmra.mrb[4].mxu1 %v532_v35  ;;  %v3728_v35 = vld [vmem:[#allocation32_spill] sm:$0xff] }
 0x272   :  { %1980 = vmatpush1.bf16.msra.mxu0 %v2882_v8  ;;  %2044 = vmatpush1.bf16.msra.mxu1 %v2895_v25 }
 0x273   :  { %1982 = vmatprep.subr.bf16.mxu0 %v2884_v9  ;;  %2046 = vmatprep.subr.bf16.mxu1 %v2905_v33 }
 0x276   :  { %1984 = vmatpush1.bf16.msra.mxu0 %v2888_v14  ;;  %2048 = vmatpush1.bf16.msra.mxu1 %v2907_v37 }
 0x277   :  { %1986 = vmatprep.subr.bf16.mxu0 %v2891_v17  ;;  %2050 = vmatprep.subr.bf16.mxu1 %v2913_v45 }
 0x27a   :  { %1988 = vmatpush1.bf16.msra.mxu0 %v2898_v26  ;;  %2052 = vmatpush1.bf16.msra.mxu1 %v2919_v48 }
 0x27b   :  { %1990 = vmatprep.subr.bf16.mxu0 %v2902_v30  ;;  %2054 = vmatprep.subr.bf16.mxu1 %v2922_v52 }
 0x27e   :  { %1992 = vmatpush1.bf16.msra.mxu0 %v2911_v42  ;;  %2056 = vmatpush1.bf16.msra.mxu1 %v2931_v62 }
 0x27f   :  { %1994 = vmatprep.subr.bf16.mxu0 %v2916_v46  ;;  %2058 = vmatprep.subr.bf16.mxu1 %v2934_v0 }
 0x282   :  { %1996 = vmatpush1.bf16.msra.mxu0 %v2925_v55  ;;  %2060 = vmatpush1.bf16.msra.mxu1 %v2943_v13 }
 0x283   :  { %1998 = vmatprep.subr.bf16.mxu0 %v2928_v58  ;;  %2062 = vmatprep.subr.bf16.mxu1 %v2946_v16 }
 0x286   :  { %2000 = vmatpush1.bf16.msra.mxu0 %v2937_v6  ;;  %2064 = vmatpush1.bf16.msra.mxu1 %v2955_v31 }
 0x287   :  { %2002 = vmatprep.subr.bf16.mxu0 %v2940_v7  ;;  %2066 = vmatprep.subr.bf16.mxu1 %v2958_v34 }
 0x28a   :  { %2004 = vmatpush1.bf16.msra.mxu0 %v2949_v23  ;;  %2068 = vmatpush1.bf16.msra.mxu1 %v2967_v49 }
 0x28b   :  { %2006 = vmatprep.subr.bf16.mxu0 %v2952_v24  ;;  %2070 = vmatprep.subr.bf16.mxu1 %v2970_v51 }
 0x28e   :  { %2008 = vmatpush1.bf16.msra.mxu0 %v2961_v40  ;;  %2072 = vmatpush1.bf16.msra.mxu1 %v2979_v2 }
 0x28f   :  { %2010 = vmatprep.subr.bf16.mxu0 %v2964_v41  ;;  %2074 = vmatprep.subr.bf16.mxu1 %v2982_v5 }
 0x292   :  { %2012 = vmatpush1.bf16.msra.mxu0 %v2973_v59  ;;  %2076 = vmatpush1.bf16.msra.mxu1 %v2991_v28 }
 0x293   :  { %2014 = vmatprep.subr.bf16.mxu0 %v2976_v60  ;;  %2078 = vmatprep.subr.bf16.mxu1 %v2994_v32 }
 0x296   :  { %2016 = vmatpush1.bf16.msra.mxu0 %v2985_v18  ;;  %2080 = vmatpush1.bf16.msra.mxu1 %v3003_v54 }
 0x297   :  { %2018 = vmatprep.subr.bf16.mxu0 %v2988_v19  ;;  %2082 = vmatprep.subr.bf16.mxu1 %v3680_v50 }
 0x29a   :  { %2020 = vmatpush1.bf16.msra.mxu0 %v2997_v43  ;;  %2084 = vmatpush1.bf16.msra.mxu1 %v3683_v20 }
 0x29b   :  { %2022 = vmatprep.subr.bf16.mxu0 %v3000_v44  ;;  %2086 = vmatprep.subr.bf16.mxu1 %v3684_v56 }
 0x29e   :  { %2024 = vmatpush1.bf16.msra.mxu0 %v3713_v63  ;;  %2088 = vmatpush1.bf16.msra.mxu1 %v3714_v29 }
 0x29f   :  { %2026 = vmatprep.subr.bf16.mxu0 %v3715_v10  ;;  %2090 = vmatprep.subr.bf16.mxu1 %v3716_v39 }
 0x2a2   :  { %2028 = vmatpush1.bf16.msra.mxu0 %v3717_v22  ;;  %2092 = vmatpush1.bf16.msra.mxu1 %v3718_v38  ;;  %v3729_v38 = vld [vmem:[#allocation30_spill] sm:$0xff]  ;;  %v3733_v22 = vld [vmem:[#allocation13_spill] sm:$0xff] }
 0x2a3   :  { %2030 = vmatprep.subr.bf16.mxu0 %v3719_v11  ;;  %2094 = vmatprep.subr.bf16.mxu1 %v3720_v4  ;;  %v3730_v11 = vld [vmem:[#allocation33_spill] sm:$0xff]  ;;  %v3731_v4 = vld [vmem:[#allocation11_spill] sm:$0xff] }
 0x2a6   :  { %2032 = vmatpush1.bf16.msra.mxu0 %v3721_v27  ;;  %2096 = vmatpush1.bf16.msra.mxu1 %v3722_v1  ;;  %v3732_v27 = vld [vmem:[#allocation12_spill] sm:$0xff] }
 0x2a7   :  { %2034 = vmatprep.subr.bf16.mxu0 %v3723_v21  ;;  %2098 = vmatprep.subr.bf16.mxu1 %v3724_v3 }
 0x2aa   :  { %2036 = vmatpush1.bf16.msra.mxu0 %v3725_v53  ;;  %2100 = vmatpush1.bf16.msra.mxu1 %v3726_v57 }
 0x2ab   :  { %2038 = vmatprep.subr.bf16.mxu0 %v3727_v61  ;;  %2102 = vmatprep.subr.bf16.mxu1 %v3728_v35 }
 0x2ae   :  { %2040 = vmatpush1.bf16.msra.mxu0 %v3729_v38  ;;  %2104 = vmatpush1.bf16.msra.mxu1 %v3730_v11 }
 0x2af   :  { %2106 = vmatprep.subr.bf16.mxu0 %v3731_v4  ;;  %2170 = vmatprep.subr.bf16.mxu1 %v3732_v27 }
 0x344   :  { %v599_v1 = vpop.f32.mrb[4].mxu0  ;;  %v670_v21 = vpop.f32.mrb[4].mxu1 }
 0x345   :  { %v600_v3 = vadd.f32 %v599_v1, %v3733_v22  ;;  %v601_v39 = vpop.f32.mrb[5].mxu0  ;;  %v672_v53 = vpop.f32.mrb[5].mxu1  ;;  %v671_v11 = vadd.f32 %v670_v21, %v3150_v12 }
 0x346   :  { %v602_v57 = vadd.f32 %v601_v39, %v3712_v47  ;;  %v673_v38 = vadd.f32 %v672_v53, %v3147_v15 }
 0x347   :  { %v1575_v10 = vmul.f32 -1.442695, %v600_v3 }
 0x348   :  { %v1576_v61 = vmul.f32 -1.442695, %v602_v57  ;;  %v1577_v35 = vmul.f32 -1.442695, %v673_v38 }
 0x349   :  { %2657 = vpow2.f32 %v1575_v10 }
 0x34a   :  { %2659 = vpow2.f32 %v1576_v61 }
 0x34b   :  { %2661 = vpow2.f32 %v1577_v35  ;;  %v3739_v35 = vld [vmem:[#allocation24_spill] sm:$0xff] }
 0x34c   :  { %2663 = vtanh.f32 %v671_v11  ;;  %v702_v11 = vld [vmem:[#allocation2 + $0x18] sm:$0xff] }
 0x353   :  { %v2658_v4 = vpop.eup %2657 }
 0x354   :  { %v2660_v27 = vpop.eup %2659  ;;  %v678_v29 = vadd.f32 1.0, %v2658_v4 }
 0x355   :  { %v684_v63 = vadd.f32 1.0, %v2660_v27  ;;  %v2662_v1 = vpop.eup %2661  ;;  %v3738_v27 = vld [vmem:[#allocation18_spill] sm:$0xff] }
 0x356   :  { %2665 = vrcp.f32 %v678_v29  ;;  %v2664_v22 = vpop.eup %2663  ;;  %v691_v3 = vadd.f32 1.0, %v2662_v1  ;;  %v3736_v29 = vld [vmem:[#allocation15_spill] sm:$0xff] }
 0x357   :  { %2667 = vrcp.f32 %v684_v63  ;;  %v3735_v63 = vld [vmem:[#allocation20_spill] sm:$0xff]  ;;  %v3740_v1 = vld [vmem:[#allocation19_spill] sm:$0xff] }
 0x358   :  { %2669 = vrcp.f32 %v691_v3  ;;  %v3742_v3 = vld [vmem:[#allocation22_spill] sm:$0xff] }
 0x360   :  { %v2666_v39 = vpop.eup %2665 }
 0x361   :  { %v2668_v57 = vpop.eup %2667  ;;  %v695_v10 = vmul.f32 %v2666_v39, %v2664_v22  ;;  %v3737_v22 = vld [vmem:[#allocation21_spill] sm:$0xff] }
 0x362   :  { %v694_v61 = vmul.f32 %v2668_v57, %v3225_v36  ;;  %v2670_v38 = vpop.eup %2669  ;;  %v3734_v36 = vld [vmem:[#allocation14_spill] sm:$0xff]  ;;  %v3741_v39 = vld [vmem:[#allocation25_spill] sm:$0xff]  ;;  %v3743_v57 = vld [vmem:[#allocation28_spill] sm:$0xff] }
 0x364   :  { %v3297_v53 = vadd.f32 %v695_v10, %v694_v61  ;;  %v3744_v10 = vld [vmem:[#allocation23_spill] sm:$0xff]  ;;  %v3745_v61 = vld [vmem:[#allocation29_spill] sm:$0xff] }
 0x366   :  { %2671 = vtanh.f32 %v3297_v53 }
 0x370   :  { %v2672_v21 = vpop.eup %2671 }
 0x371   :  { %v698_v4 = vmul.f32 %v2672_v21, %v2670_v38  ;;  %v3746_v38 = vld [vmem:[#allocation26_spill] sm:$0xff]  ;;  %v3747_v21 = vld [vmem:[#allocation31_spill] sm:$0xff] }
 0x373   :  { %700 = vst [vmem:[#allocation7 + $0x10] sm:$0xff] %v698_v4  ;;  %767 = vmatprep.mubr.f32.mxu0 %v698_v4  ;;  %838 = vmatprep.mubr.f32.mxu1 %v698_v4  ;;  %v3748_v4 = vld [vmem:[#allocation27_spill] sm:$0xff] }
 0x374   :  { %768 = vmatmul.mubr.f32.vlgmr.msra.gmra.mrb[6].mxu0 %v702_v11  ;;  %839 = vmatmul.mubr.f32.vlgmr.msra.gmra.mrb[6].mxu1 %v702_v11  ;;  %v3749_v11 = vld [vmem:[#allocation32_spill] sm:$0xff] }
 0x375   :  { %2108 = vmatpush1.bf16.msra.mxu0 %v2882_v8  ;;  %2172 = vmatpush1.bf16.msra.mxu1 %v2895_v25 }
 0x376   :  { %2110 = vmatprep.subr.bf16.mxu0 %v2884_v9  ;;  %2174 = vmatprep.subr.bf16.mxu1 %v2905_v33 }
 0x379   :  { %2112 = vmatpush1.bf16.msra.mxu0 %v2888_v14  ;;  %2176 = vmatpush1.bf16.msra.mxu1 %v2907_v37 }
 0x37a   :  { %2114 = vmatprep.subr.bf16.mxu0 %v2891_v17  ;;  %2178 = vmatprep.subr.bf16.mxu1 %v2913_v45 }
 0x37d   :  { %2116 = vmatpush1.bf16.msra.mxu0 %v2898_v26  ;;  %2180 = vmatpush1.bf16.msra.mxu1 %v2919_v48 }
 0x37e   :  { %2118 = vmatprep.subr.bf16.mxu0 %v2902_v30  ;;  %2182 = vmatprep.subr.bf16.mxu1 %v2922_v52 }
 0x381   :  { %2120 = vmatpush1.bf16.msra.mxu0 %v2911_v42  ;;  %2184 = vmatpush1.bf16.msra.mxu1 %v2931_v62 }
 0x382   :  { %2122 = vmatprep.subr.bf16.mxu0 %v2916_v46  ;;  %2186 = vmatprep.subr.bf16.mxu1 %v2934_v0 }
 0x385   :  { %2124 = vmatpush1.bf16.msra.mxu0 %v2925_v55  ;;  %2188 = vmatpush1.bf16.msra.mxu1 %v2943_v13 }
 0x386   :  { %2126 = vmatprep.subr.bf16.mxu0 %v2928_v58  ;;  %2190 = vmatprep.subr.bf16.mxu1 %v2946_v16 }
 0x389   :  { %2128 = vmatpush1.bf16.msra.mxu0 %v2937_v6  ;;  %2192 = vmatpush1.bf16.msra.mxu1 %v2955_v31 }
 0x38a   :  { %2130 = vmatprep.subr.bf16.mxu0 %v2940_v7  ;;  %2194 = vmatprep.subr.bf16.mxu1 %v2958_v34 }
 0x38d   :  { %2132 = vmatpush1.bf16.msra.mxu0 %v2949_v23  ;;  %2196 = vmatpush1.bf16.msra.mxu1 %v2967_v49 }
 0x38e   :  { %2134 = vmatprep.subr.bf16.mxu0 %v2952_v24  ;;  %2198 = vmatprep.subr.bf16.mxu1 %v2970_v51 }
 0x391   :  { %2136 = vmatpush1.bf16.msra.mxu0 %v2961_v40  ;;  %2200 = vmatpush1.bf16.msra.mxu1 %v2979_v2 }
 0x392   :  { %2138 = vmatprep.subr.bf16.mxu0 %v2964_v41  ;;  %2202 = vmatprep.subr.bf16.mxu1 %v2982_v5 }
 0x395   :  { %2140 = vmatpush1.bf16.msra.mxu0 %v2973_v59  ;;  %2204 = vmatpush1.bf16.msra.mxu1 %v2991_v28 }
 0x396   :  { %2142 = vmatprep.subr.bf16.mxu0 %v2976_v60  ;;  %2206 = vmatprep.subr.bf16.mxu1 %v2994_v32 }
 0x399   :  { %2144 = vmatpush1.bf16.msra.mxu0 %v2985_v18  ;;  %2208 = vmatpush1.bf16.msra.mxu1 %v3003_v54 }
 0x39a   :  { %2146 = vmatprep.subr.bf16.mxu0 %v2988_v19  ;;  %2210 = vmatprep.subr.bf16.mxu1 %v3680_v50 }
 0x39d   :  { %2148 = vmatpush1.bf16.msra.mxu0 %v2997_v43  ;;  %2212 = vmatpush1.bf16.msra.mxu1 %v3683_v20 }
 0x39e   :  { %2150 = vmatprep.subr.bf16.mxu0 %v3000_v44  ;;  %2214 = vmatprep.subr.bf16.mxu1 %v3684_v56 }
 0x3a1   :  { %2152 = vmatpush1.bf16.msra.mxu0 %v3734_v36  ;;  %2216 = vmatpush1.bf16.msra.mxu1 %v3735_v63 }
 0x3a2   :  { %2154 = vmatprep.subr.bf16.mxu0 %v3736_v29  ;;  %2218 = vmatprep.subr.bf16.mxu1 %v3737_v22 }
 0x3a5   :  { %2156 = vmatpush1.bf16.msra.mxu0 %v3738_v27  ;;  %2220 = vmatpush1.bf16.msra.mxu1 %v3739_v35  ;;  %v3750_v35 = vld [vmem:[#allocation30_spill] sm:$0xff]  ;;  %v3754_v27 = vld [vmem:[#allocation13_spill] sm:$0xff] }
 0x3a6   :  { %2158 = vmatprep.subr.bf16.mxu0 %v3740_v1  ;;  %2222 = vmatprep.subr.bf16.mxu1 %v3741_v39  ;;  %v3751_v1 = vld [vmem:[#allocation33_spill] sm:$0xff]  ;;  %v3752_v39 = vld [vmem:[#allocation11_spill] sm:$0xff] }
 0x3a9   :  { %2160 = vmatpush1.bf16.msra.mxu0 %v3742_v3  ;;  %2224 = vmatpush1.bf16.msra.mxu1 %v3743_v57  ;;  %v3753_v3 = vld [vmem:[#allocation12_spill] sm:$0xff] }
 0x3aa   :  { %2162 = vmatprep.subr.bf16.mxu0 %v3744_v10  ;;  %2226 = vmatprep.subr.bf16.mxu1 %v3745_v61 }
 0x3ad   :  { %2164 = vmatpush1.bf16.msra.mxu0 %v3746_v38  ;;  %2228 = vmatpush1.bf16.msra.mxu1 %v3747_v21 }
 0x3ae   :  { %2166 = vmatprep.subr.bf16.mxu0 %v3748_v4  ;;  %2230 = vmatprep.subr.bf16.mxu1 %v3749_v11 }
 0x3b1   :  { %2168 = vmatpush1.bf16.msra.mxu0 %v3750_v35  ;;  %2232 = vmatpush1.bf16.msra.mxu1 %v3751_v1 }
 0x3b2   :  { %2234 = vmatprep.subr.bf16.mxu0 %v3752_v39  ;;  %2298 = vmatprep.subr.bf16.mxu1 %v3753_v3 }
 0x447   :  { %v769_v57 = vpop.f32.mrb[6].mxu0  ;;  %v840_v10 = vpop.f32.mrb[6].mxu1 }
 0x448   :  { %v770_v61 = vadd.f32 %v769_v57, %v3754_v27  ;;  %v771_v22 = vpop.f32.mrb[7].mxu0  ;;  %v842_v38 = vpop.f32.mrb[7].mxu1  ;;  %v841_v1 = vadd.f32 %v840_v10, %v3150_v12 }
 0x449   :  { %v772_v21 = vadd.f32 %v771_v22, %v3712_v47  ;;  %v843_v35 = vadd.f32 %v842_v38, %v3147_v15 }
 0x44a   :  { %v1578_v29 = vmul.f32 -1.442695, %v770_v61 }
 0x44b   :  { %v1579_v4 = vmul.f32 -1.442695, %v772_v21  ;;  %v1580_v11 = vmul.f32 -1.442695, %v843_v35 }
 0x44c   :  { %2673 = vpow2.f32 %v1578_v29 }
 0x44d   :  { %2675 = vpow2.f32 %v1579_v4 }
 0x44e   :  { %2677 = vpow2.f32 %v1580_v11  ;;  %v3760_v11 = vld [vmem:[#allocation24_spill] sm:$0xff] }
 0x44f   :  { %2679 = vtanh.f32 %v841_v1  ;;  %v872_v1 = vld [vmem:[#allocation2 + $0x20] sm:$0xff] }
 0x456   :  { %v2674_v39 = vpop.eup %2673 }
 0x457   :  { %v2676_v3 = vpop.eup %2675  ;;  %v848_v63 = vadd.f32 1.0, %v2674_v39 }
 0x458   :  { %v854_v36 = vadd.f32 1.0, %v2676_v3  ;;  %v2678_v57 = vpop.eup %2677  ;;  %v3759_v3 = vld [vmem:[#allocation18_spill] sm:$0xff] }
 0x459   :  { %2681 = vrcp.f32 %v848_v63  ;;  %v2680_v27 = vpop.eup %2679  ;;  %v861_v61 = vadd.f32 1.0, %v2678_v57  ;;  %v3757_v63 = vld [vmem:[#allocation15_spill] sm:$0xff] }
 0x45a   :  { %2683 = vrcp.f32 %v854_v36  ;;  %v3756_v36 = vld [vmem:[#allocation20_spill] sm:$0xff]  ;;  %v3761_v57 = vld [vmem:[#allocation19_spill] sm:$0xff] }
 0x45b   :  { %2685 = vrcp.f32 %v861_v61  ;;  %v3763_v61 = vld [vmem:[#allocation22_spill] sm:$0xff] }
 0x463   :  { %v2682_v22 = vpop.eup %2681 }
 0x464   :  { %v2684_v21 = vpop.eup %2683  ;;  %v865_v29 = vmul.f32 %v2682_v22, %v2680_v27  ;;  %v3758_v27 = vld [vmem:[#allocation21_spill] sm:$0xff] }
 0x465   :  { %v864_v4 = vmul.f32 %v2684_v21, %v3297_v53  ;;  %v2686_v35 = vpop.eup %2685  ;;  %v3755_v53 = vld [vmem:[#allocation14_spill] sm:$0xff]  ;;  %v3762_v22 = vld [vmem:[#allocation25_spill] sm:$0xff]  ;;  %v3764_v21 = vld [vmem:[#allocation28_spill] sm:$0xff] }
 0x467   :  { %v3369_v38 = vadd.f32 %v865_v29, %v864_v4  ;;  %v3765_v29 = vld [vmem:[#allocation23_spill] sm:$0xff]  ;;  %v3766_v4 = vld [vmem:[#allocation29_spill] sm:$0xff] }
 0x469   :  { %2687 = vtanh.f32 %v3369_v38 }
 0x473   :  { %v2688_v10 = vpop.eup %2687 }
 0x474   :  { %v868_v39 = vmul.f32 %v2688_v10, %v2686_v35  ;;  %v3767_v35 = vld [vmem:[#allocation26_spill] sm:$0xff]  ;;  %v3768_v10 = vld [vmem:[#allocation31_spill] sm:$0xff] }
 0x476   :  { %870 = vst [vmem:[#allocation7 + $0x18] sm:$0xff] %v868_v39  ;;  %937 = vmatprep.mubr.f32.mxu0 %v868_v39  ;;  %1008 = vmatprep.mubr.f32.mxu1 %v868_v39  ;;  %v3769_v39 = vld [vmem:[#allocation27_spill] sm:$0xff] }
 0x477   :  { %938 = vmatmul.mubr.f32.vlgmr.msra.gmra.mrb[8].mxu0 %v872_v1  ;;  %1009 = vmatmul.mubr.f32.vlgmr.msra.gmra.mrb[8].mxu1 %v872_v1  ;;  %v3770_v1 = vld [vmem:[#allocation32_spill] sm:$0xff] }
 0x478   :  { %2236 = vmatpush1.bf16.msra.mxu0 %v2882_v8  ;;  %2300 = vmatpush1.bf16.msra.mxu1 %v2895_v25 }
 0x479   :  { %2238 = vmatprep.subr.bf16.mxu0 %v2884_v9  ;;  %2302 = vmatprep.subr.bf16.mxu1 %v2905_v33 }
 0x47c   :  { %2240 = vmatpush1.bf16.msra.mxu0 %v2888_v14  ;;  %2304 = vmatpush1.bf16.msra.mxu1 %v2907_v37 }
 0x47d   :  { %2242 = vmatprep.subr.bf16.mxu0 %v2891_v17  ;;  %2306 = vmatprep.subr.bf16.mxu1 %v2913_v45 }
 0x480   :  { %2244 = vmatpush1.bf16.msra.mxu0 %v2898_v26  ;;  %2308 = vmatpush1.bf16.msra.mxu1 %v2919_v48 }
 0x481   :  { %2246 = vmatprep.subr.bf16.mxu0 %v2902_v30  ;;  %2310 = vmatprep.subr.bf16.mxu1 %v2922_v52 }
 0x484   :  { %2248 = vmatpush1.bf16.msra.mxu0 %v2911_v42  ;;  %2312 = vmatpush1.bf16.msra.mxu1 %v2931_v62 }
 0x485   :  { %2250 = vmatprep.subr.bf16.mxu0 %v2916_v46  ;;  %2314 = vmatprep.subr.bf16.mxu1 %v2934_v0 }
 0x488   :  { %2252 = vmatpush1.bf16.msra.mxu0 %v2925_v55  ;;  %2316 = vmatpush1.bf16.msra.mxu1 %v2943_v13 }
 0x489   :  { %2254 = vmatprep.subr.bf16.mxu0 %v2928_v58  ;;  %2318 = vmatprep.subr.bf16.mxu1 %v2946_v16 }
 0x48c   :  { %2256 = vmatpush1.bf16.msra.mxu0 %v2937_v6  ;;  %2320 = vmatpush1.bf16.msra.mxu1 %v2955_v31 }
 0x48d   :  { %2258 = vmatprep.subr.bf16.mxu0 %v2940_v7  ;;  %2322 = vmatprep.subr.bf16.mxu1 %v2958_v34 }
 0x490   :  { %2260 = vmatpush1.bf16.msra.mxu0 %v2949_v23  ;;  %2324 = vmatpush1.bf16.msra.mxu1 %v2967_v49 }
 0x491   :  { %2262 = vmatprep.subr.bf16.mxu0 %v2952_v24  ;;  %2326 = vmatprep.subr.bf16.mxu1 %v2970_v51 }
 0x494   :  { %2264 = vmatpush1.bf16.msra.mxu0 %v2961_v40  ;;  %2328 = vmatpush1.bf16.msra.mxu1 %v2979_v2 }
 0x495   :  { %2266 = vmatprep.subr.bf16.mxu0 %v2964_v41  ;;  %2330 = vmatprep.subr.bf16.mxu1 %v2982_v5 }
 0x498   :  { %2268 = vmatpush1.bf16.msra.mxu0 %v2973_v59  ;;  %2332 = vmatpush1.bf16.msra.mxu1 %v2991_v28 }
 0x499   :  { %2270 = vmatprep.subr.bf16.mxu0 %v2976_v60  ;;  %2334 = vmatprep.subr.bf16.mxu1 %v2994_v32 }
 0x49c   :  { %2272 = vmatpush1.bf16.msra.mxu0 %v2985_v18  ;;  %2336 = vmatpush1.bf16.msra.mxu1 %v3003_v54 }
 0x49d   :  { %2274 = vmatprep.subr.bf16.mxu0 %v2988_v19  ;;  %2338 = vmatprep.subr.bf16.mxu1 %v3680_v50 }
 0x4a0   :  { %2276 = vmatpush1.bf16.msra.mxu0 %v2997_v43  ;;  %2340 = vmatpush1.bf16.msra.mxu1 %v3683_v20 }
 0x4a1   :  { %2278 = vmatprep.subr.bf16.mxu0 %v3000_v44  ;;  %2342 = vmatprep.subr.bf16.mxu1 %v3684_v56 }
 0x4a4   :  { %2280 = vmatpush1.bf16.msra.mxu0 %v3755_v53  ;;  %2344 = vmatpush1.bf16.msra.mxu1 %v3756_v36 }
 0x4a5   :  { %2282 = vmatprep.subr.bf16.mxu0 %v3757_v63  ;;  %2346 = vmatprep.subr.bf16.mxu1 %v3758_v27 }
 0x4a8   :  { %2284 = vmatpush1.bf16.msra.mxu0 %v3759_v3  ;;  %2348 = vmatpush1.bf16.msra.mxu1 %v3760_v11  ;;  %v3771_v11 = vld [vmem:[#allocation30_spill] sm:$0xff]  ;;  %v3775_v3 = vld [vmem:[#allocation13_spill] sm:$0xff] }
 0x4a9   :  { %2286 = vmatprep.subr.bf16.mxu0 %v3761_v57  ;;  %2350 = vmatprep.subr.bf16.mxu1 %v3762_v22  ;;  %v3772_v57 = vld [vmem:[#allocation33_spill] sm:$0xff]  ;;  %v3773_v22 = vld [vmem:[#allocation11_spill] sm:$0xff] }
 0x4ac   :  { %2288 = vmatpush1.bf16.msra.mxu0 %v3763_v61  ;;  %2352 = vmatpush1.bf16.msra.mxu1 %v3764_v21  ;;  %v3774_v61 = vld [vmem:[#allocation12_spill] sm:$0xff] }
 0x4ad   :  { %2290 = vmatprep.subr.bf16.mxu0 %v3765_v29  ;;  %2354 = vmatprep.subr.bf16.mxu1 %v3766_v4 }
 0x4b0   :  { %2292 = vmatpush1.bf16.msra.mxu0 %v3767_v35  ;;  %2356 = vmatpush1.bf16.msra.mxu1 %v3768_v10 }
 0x4b1   :  { %2294 = vmatprep.subr.bf16.mxu0 %v3769_v39  ;;  %2358 = vmatprep.subr.bf16.mxu1 %v3770_v1 }
 0x4b4   :  { %2296 = vmatpush1.bf16.msra.mxu0 %v3771_v11  ;;  %2360 = vmatpush1.bf16.msra.mxu1 %v3772_v57 }
 0x4b5   :  { %2362 = vmatprep.subr.bf16.mxu0 %v3773_v22  ;;  %2426 = vmatprep.subr.bf16.mxu1 %v3774_v61 }
 0x54a   :  { %v939_v21 = vpop.f32.mrb[8].mxu0  ;;  %v1010_v29 = vpop.f32.mrb[8].mxu1 }
 0x54b   :  { %v940_v4 = vadd.f32 %v939_v21, %v3775_v3  ;;  %v941_v27 = vpop.f32.mrb[9].mxu0  ;;  %v1012_v35 = vpop.f32.mrb[9].mxu1  ;;  %v1011_v57 = vadd.f32 %v1010_v29, %v3150_v12 }
 0x54c   :  { %v942_v10 = vadd.f32 %v941_v27, %v3712_v47  ;;  %v1013_v11 = vadd.f32 %v1012_v35, %v3147_v15 }
 0x54d   :  { %v1581_v63 = vmul.f32 -1.442695, %v940_v4 }
 0x54e   :  { %v1582_v39 = vmul.f32 -1.442695, %v942_v10  ;;  %v1583_v1 = vmul.f32 -1.442695, %v1013_v11 }
 0x54f   :  { %2689 = vpow2.f32 %v1581_v63 }
 0x550   :  { %2691 = vpow2.f32 %v1582_v39 }
 0x551   :  { %2693 = vpow2.f32 %v1583_v1  ;;  %v3781_v1 = vld [vmem:[#allocation24_spill] sm:$0xff] }
 0x552   :  { %2695 = vtanh.f32 %v1011_v57  ;;  %v1042_v57 = vld [vmem:[#allocation2 + $0x28] sm:$0xff] }
 0x559   :  { %v2690_v22 = vpop.eup %2689 }
 0x55a   :  { %v2692_v61 = vpop.eup %2691  ;;  %v1018_v36 = vadd.f32 1.0, %v2690_v22 }
 0x55b   :  { %v1024_v53 = vadd.f32 1.0, %v2692_v61  ;;  %v2694_v21 = vpop.eup %2693  ;;  %v3780_v61 = vld [vmem:[#allocation18_spill] sm:$0xff] }
 0x55c   :  { %2697 = vrcp.f32 %v1018_v36  ;;  %v2696_v3 = vpop.eup %2695  ;;  %v1031_v4 = vadd.f32 1.0, %v2694_v21  ;;  %v3778_v36 = vld [vmem:[#allocation15_spill] sm:$0xff] }
 0x55d   :  { %2699 = vrcp.f32 %v1024_v53  ;;  %v3777_v53 = vld [vmem:[#allocation20_spill] sm:$0xff]  ;;  %v3782_v21 = vld [vmem:[#allocation19_spill] sm:$0xff] }
 0x55e   :  { %2701 = vrcp.f32 %v1031_v4  ;;  %v3784_v4 = vld [vmem:[#allocation22_spill] sm:$0xff] }
 0x566   :  { %v2698_v27 = vpop.eup %2697 }
 0x567   :  { %v2700_v10 = vpop.eup %2699  ;;  %v1035_v63 = vmul.f32 %v2698_v27, %v2696_v3  ;;  %v3779_v3 = vld [vmem:[#allocation21_spill] sm:$0xff] }
 0x568   :  { %v1034_v39 = vmul.f32 %v2700_v10, %v3369_v38  ;;  %v2702_v11 = vpop.eup %2701  ;;  %v3776_v38 = vld [vmem:[#allocation14_spill] sm:$0xff]  ;;  %v3783_v27 = vld [vmem:[#allocation25_spill] sm:$0xff]  ;;  %v3785_v10 = vld [vmem:[#allocation28_spill] sm:$0xff] }
 0x56a   :  { %v3441_v35 = vadd.f32 %v1035_v63, %v1034_v39  ;;  %v3786_v63 = vld [vmem:[#allocation23_spill] sm:$0xff]  ;;  %v3787_v39 = vld [vmem:[#allocation29_spill] sm:$0xff] }
 0x56c   :  { %2703 = vtanh.f32 %v3441_v35 }
 0x576   :  { %v2704_v29 = vpop.eup %2703 }
 0x577   :  { %v1038_v22 = vmul.f32 %v2704_v29, %v2702_v11  ;;  %v3788_v11 = vld [vmem:[#allocation26_spill] sm:$0xff]  ;;  %v3789_v29 = vld [vmem:[#allocation31_spill] sm:$0xff] }
 0x579   :  { %1040 = vst [vmem:[#allocation7 + $0x20] sm:$0xff] %v1038_v22  ;;  %1107 = vmatprep.mubr.f32.mxu0 %v1038_v22  ;;  %1178 = vmatprep.mubr.f32.mxu1 %v1038_v22  ;;  %v3790_v22 = vld [vmem:[#allocation27_spill] sm:$0xff] }
 0x57a   :  { %1108 = vmatmul.mubr.f32.vlgmr.msra.gmra.mrb[10].mxu0 %v1042_v57  ;;  %1179 = vmatmul.mubr.f32.vlgmr.msra.gmra.mrb[10].mxu1 %v1042_v57  ;;  %v3791_v57 = vld [vmem:[#allocation32_spill] sm:$0xff] }
 0x57b   :  { %2364 = vmatpush1.bf16.msra.mxu0 %v2882_v8  ;;  %2428 = vmatpush1.bf16.msra.mxu1 %v2895_v25 }
 0x57c   :  { %2366 = vmatprep.subr.bf16.mxu0 %v2884_v9  ;;  %2430 = vmatprep.subr.bf16.mxu1 %v2905_v33 }
 0x57f   :  { %2368 = vmatpush1.bf16.msra.mxu0 %v2888_v14  ;;  %2432 = vmatpush1.bf16.msra.mxu1 %v2907_v37 }
 0x580   :  { %2370 = vmatprep.subr.bf16.mxu0 %v2891_v17  ;;  %2434 = vmatprep.subr.bf16.mxu1 %v2913_v45 }
 0x583   :  { %2372 = vmatpush1.bf16.msra.mxu0 %v2898_v26  ;;  %2436 = vmatpush1.bf16.msra.mxu1 %v2919_v48 }
 0x584   :  { %2374 = vmatprep.subr.bf16.mxu0 %v2902_v30  ;;  %2438 = vmatprep.subr.bf16.mxu1 %v2922_v52 }
 0x587   :  { %2376 = vmatpush1.bf16.msra.mxu0 %v2911_v42  ;;  %2440 = vmatpush1.bf16.msra.mxu1 %v2931_v62 }
 0x588   :  { %2378 = vmatprep.subr.bf16.mxu0 %v2916_v46  ;;  %2442 = vmatprep.subr.bf16.mxu1 %v2934_v0 }
 0x58b   :  { %2380 = vmatpush1.bf16.msra.mxu0 %v2925_v55  ;;  %2444 = vmatpush1.bf16.msra.mxu1 %v2943_v13 }
 0x58c   :  { %2382 = vmatprep.subr.bf16.mxu0 %v2928_v58  ;;  %2446 = vmatprep.subr.bf16.mxu1 %v2946_v16 }
 0x58f   :  { %2384 = vmatpush1.bf16.msra.mxu0 %v2937_v6  ;;  %2448 = vmatpush1.bf16.msra.mxu1 %v2955_v31 }
 0x590   :  { %2386 = vmatprep.subr.bf16.mxu0 %v2940_v7  ;;  %2450 = vmatprep.subr.bf16.mxu1 %v2958_v34 }
 0x593   :  { %2388 = vmatpush1.bf16.msra.mxu0 %v2949_v23  ;;  %2452 = vmatpush1.bf16.msra.mxu1 %v2967_v49 }
 0x594   :  { %2390 = vmatprep.subr.bf16.mxu0 %v2952_v24  ;;  %2454 = vmatprep.subr.bf16.mxu1 %v2970_v51 }
 0x597   :  { %2392 = vmatpush1.bf16.msra.mxu0 %v2961_v40  ;;  %2456 = vmatpush1.bf16.msra.mxu1 %v2979_v2 }
 0x598   :  { %2394 = vmatprep.subr.bf16.mxu0 %v2964_v41  ;;  %2458 = vmatprep.subr.bf16.mxu1 %v2982_v5 }
 0x59b   :  { %2396 = vmatpush1.bf16.msra.mxu0 %v2973_v59  ;;  %2460 = vmatpush1.bf16.msra.mxu1 %v2991_v28 }
 0x59c   :  { %2398 = vmatprep.subr.bf16.mxu0 %v2976_v60  ;;  %2462 = vmatprep.subr.bf16.mxu1 %v2994_v32 }
 0x59f   :  { %2400 = vmatpush1.bf16.msra.mxu0 %v2985_v18  ;;  %2464 = vmatpush1.bf16.msra.mxu1 %v3003_v54 }
 0x5a0   :  { %2402 = vmatprep.subr.bf16.mxu0 %v2988_v19  ;;  %2466 = vmatprep.subr.bf16.mxu1 %v3680_v50 }
 0x5a3   :  { %2404 = vmatpush1.bf16.msra.mxu0 %v2997_v43  ;;  %2468 = vmatpush1.bf16.msra.mxu1 %v3683_v20 }
 0x5a4   :  { %2406 = vmatprep.subr.bf16.mxu0 %v3000_v44  ;;  %2470 = vmatprep.subr.bf16.mxu1 %v3684_v56 }
 0x5a7   :  { %2408 = vmatpush1.bf16.msra.mxu0 %v3776_v38  ;;  %2472 = vmatpush1.bf16.msra.mxu1 %v3777_v53 }
 0x5a8   :  { %2410 = vmatprep.subr.bf16.mxu0 %v3778_v36  ;;  %2474 = vmatprep.subr.bf16.mxu1 %v3779_v3 }
 0x5ab   :  { %2412 = vmatpush1.bf16.msra.mxu0 %v3780_v61  ;;  %2476 = vmatpush1.bf16.msra.mxu1 %v3781_v1  ;;  %v3792_v1 = vld [vmem:[#allocation30_spill] sm:$0xff]  ;;  %v3796_v61 = vld [vmem:[#allocation13_spill] sm:$0xff] }
 0x5ac   :  { %2414 = vmatprep.subr.bf16.mxu0 %v3782_v21  ;;  %2478 = vmatprep.subr.bf16.mxu1 %v3783_v27  ;;  %v3793_v21 = vld [vmem:[#allocation33_spill] sm:$0xff]  ;;  %v3794_v27 = vld [vmem:[#allocation11_spill] sm:$0xff] }
 0x5af   :  { %2416 = vmatpush1.bf16.msra.mxu0 %v3784_v4  ;;  %2480 = vmatpush1.bf16.msra.mxu1 %v3785_v10  ;;  %v3795_v4 = vld [vmem:[#allocation12_spill] sm:$0xff] }
 0x5b0   :  { %2418 = vmatprep.subr.bf16.mxu0 %v3786_v63  ;;  %2482 = vmatprep.subr.bf16.mxu1 %v3787_v39 }
 0x5b3   :  { %2420 = vmatpush1.bf16.msra.mxu0 %v3788_v11  ;;  %2484 = vmatpush1.bf16.msra.mxu1 %v3789_v29 }
 0x5b4   :  { %2422 = vmatprep.subr.bf16.mxu0 %v3790_v22  ;;  %2486 = vmatprep.subr.bf16.mxu1 %v3791_v57 }
 0x5b7   :  { %2424 = vmatpush1.bf16.msra.mxu0 %v3792_v1  ;;  %2488 = vmatpush1.bf16.msra.mxu1 %v3793_v21 }
 0x5b8   :  { %2490 = vmatprep.subr.bf16.mxu0 %v3794_v27  ;;  %2554 = vmatprep.subr.bf16.mxu1 %v3795_v4 }
 0x64d   :  { %v1109_v10 = vpop.f32.mrb[10].mxu0  ;;  %v1180_v63 = vpop.f32.mrb[10].mxu1 }
 0x64e   :  { %v1110_v39 = vadd.f32 %v1109_v10, %v3796_v61  ;;  %v1111_v3 = vpop.f32.mrb[11].mxu0  ;;  %v1182_v11 = vpop.f32.mrb[11].mxu1  ;;  %v1181_v21 = vadd.f32 %v1180_v63, %v3150_v12 }
 0x64f   :  { %v1112_v29 = vadd.f32 %v1111_v3, %v3712_v47  ;;  %v1183_v1 = vadd.f32 %v1182_v11, %v3147_v15 }
 0x650   :  { %v1584_v36 = vmul.f32 -1.442695, %v1110_v39 }
 0x651   :  { %v1585_v22 = vmul.f32 -1.442695, %v1112_v29  ;;  %v1586_v57 = vmul.f32 -1.442695, %v1183_v1 }
 0x652   :  { %2705 = vpow2.f32 %v1584_v36 }
 0x653   :  { %2707 = vpow2.f32 %v1585_v22 }
 0x654   :  { %2709 = vpow2.f32 %v1586_v57 }
 0x655   :  { %2711 = vtanh.f32 %v1181_v21  ;;  %v1212_v21 = vld [vmem:[#allocation2 + $0x30] sm:$0xff] }
 0x65c   :  { %v2706_v27 = vpop.eup %2705 }
 0x65d   :  { %v2708_v4 = vpop.eup %2707  ;;  %v1188_v53 = vadd.f32 1.0, %v2706_v27 }
 0x65e   :  { %v1194_v38 = vadd.f32 1.0, %v2708_v4  ;;  %v2710_v10 = vpop.eup %2709 }
 0x65f   :  { %2713 = vrcp.f32 %v1188_v53  ;;  %v2712_v61 = vpop.eup %2711  ;;  %v1201_v39 = vadd.f32 1.0, %v2710_v10 }
 0x660   :  { %2715 = vrcp.f32 %v1194_v38  ;;  %v1382_v38 = vld [vmem:[#allocation2 + $0x38] sm:$0xff] }
 0x661   :  { %2717 = vrcp.f32 %v1201_v39 }
 0x669   :  { %v2714_v3 = vpop.eup %2713 }
 0x66a   :  { %v2716_v29 = vpop.eup %2715  ;;  %v1205_v36 = vmul.f32 %v2714_v3, %v2712_v61 }
 0x66b   :  { %v1204_v22 = vmul.f32 %v2716_v29, %v3441_v35  ;;  %v2718_v1 = vpop.eup %2717 }
 0x66d   :  { %v3513_v11 = vadd.f32 %v1205_v36, %v1204_v22 }
 0x66f   :  { %2719 = vtanh.f32 %v3513_v11 }
 0x679   :  { %v2720_v63 = vpop.eup %2719 }
 0x67a   :  { %v1208_v57 = vmul.f32 %v2720_v63, %v2718_v1 }
 0x67c   :  { %1210 = vst [vmem:[#allocation7 + $0x28] sm:$0xff] %v1208_v57  ;;  %1277 = vmatprep.mubr.f32.mxu0 %v1208_v57  ;;  %1348 = vmatprep.mubr.f32.mxu1 %v1208_v57 }
 0x67d   :  { %1278 = vmatmul.mubr.f32.vlgmr.msra.gmra.mrb[12].mxu0 %v1212_v21  ;;  %1349 = vmatmul.mubr.f32.vlgmr.msra.gmra.mrb[12].mxu1 %v1212_v21 }
 0x67e   :  { %2492 = vmatpush1.bf16.msra.mxu0 %v2882_v8  ;;  %2556 = vmatpush1.bf16.msra.mxu1 %v2895_v25  ;;  %v3797_v8 = vld [vmem:[#allocation14_spill] sm:$0xff] }
 0x67f   :  { %2494 = vmatprep.subr.bf16.mxu0 %v2884_v9  ;;  %2558 = vmatprep.subr.bf16.mxu1 %v2905_v33  ;;  %v3798_v9 = vld [vmem:[#allocation20_spill] sm:$0xff]  ;;  %v3801_v25 = vld [vmem:[#allocation18_spill] sm:$0xff]  ;;  %v3804_v33 = vld [vmem:[#allocation25_spill] sm:$0xff] }
 0x682   :  { %2496 = vmatpush1.bf16.msra.mxu0 %v2888_v14  ;;  %2560 = vmatpush1.bf16.msra.mxu1 %v2907_v37  ;;  %v3799_v14 = vld [vmem:[#allocation15_spill] sm:$0xff]  ;;  %v3805_v37 = vld [vmem:[#allocation22_spill] sm:$0xff] }
 0x683   :  { %2498 = vmatprep.subr.bf16.mxu0 %v2891_v17  ;;  %2562 = vmatprep.subr.bf16.mxu1 %v2913_v45  ;;  %v3800_v17 = vld [vmem:[#allocation21_spill] sm:$0xff]  ;;  %v3807_v45 = vld [vmem:[#allocation23_spill] sm:$0xff] }
 0x686   :  { %2500 = vmatpush1.bf16.msra.mxu0 %v2898_v26  ;;  %2564 = vmatpush1.bf16.msra.mxu1 %v2919_v48  ;;  %v3802_v26 = vld [vmem:[#allocation24_spill] sm:$0xff]  ;;  %v3809_v48 = vld [vmem:[#allocation26_spill] sm:$0xff] }
 0x687   :  { %2502 = vmatprep.subr.bf16.mxu0 %v2902_v30  ;;  %2566 = vmatprep.subr.bf16.mxu1 %v2922_v52  ;;  %v3803_v30 = vld [vmem:[#allocation19_spill] sm:$0xff] }
 0x688   :  { %v3810_v52 = vld [vmem:[#allocation31_spill] sm:$0xff] }
 0x68a   :  { %2504 = vmatpush1.bf16.msra.mxu0 %v2911_v42  ;;  %2568 = vmatpush1.bf16.msra.mxu1 %v2931_v62  ;;  %v3806_v42 = vld [vmem:[#allocation28_spill] sm:$0xff]  ;;  %v3813_v62 = vld [vmem:[#allocation30_spill] sm:$0xff] }
 0x68b   :  { %2506 = vmatprep.subr.bf16.mxu0 %v2916_v46  ;;  %2570 = vmatprep.subr.bf16.mxu1 %v2934_v0  ;;  %v3808_v46 = vld [vmem:[#allocation29_spill] sm:$0xff] }
 0x68c   :  { %v3814_v0 = vld [vmem:[#allocation33_spill] sm:$0xff] }
 0x68e   :  { %2508 = vmatpush1.bf16.msra.mxu0 %v2925_v55  ;;  %2572 = vmatpush1.bf16.msra.mxu1 %v2943_v13  ;;  %v3811_v55 = vld [vmem:[#allocation27_spill] sm:$0xff]  ;;  %v3815_v13 = vld [vmem:[#allocation13_spill] sm:$0xff] }
 0x68f   :  { %2510 = vmatprep.subr.bf16.mxu0 %v2928_v58  ;;  %2574 = vmatprep.subr.bf16.mxu1 %v2946_v16  ;;  %v3812_v58 = vld [vmem:[#allocation32_spill] sm:$0xff] }
 0x692   :  { %2512 = vmatpush1.bf16.msra.mxu0 %v2937_v6  ;;  %2576 = vmatpush1.bf16.msra.mxu1 %v2955_v31 }
 0x693   :  { %2514 = vmatprep.subr.bf16.mxu0 %v2940_v7  ;;  %2578 = vmatprep.subr.bf16.mxu1 %v2958_v34 }
 0x696   :  { %2516 = vmatpush1.bf16.msra.mxu0 %v2949_v23  ;;  %2580 = vmatpush1.bf16.msra.mxu1 %v2967_v49 }
 0x697   :  { %2518 = vmatprep.subr.bf16.mxu0 %v2952_v24  ;;  %2582 = vmatprep.subr.bf16.mxu1 %v2970_v51 }
 0x69a   :  { %2520 = vmatpush1.bf16.msra.mxu0 %v2961_v40  ;;  %2584 = vmatpush1.bf16.msra.mxu1 %v2979_v2 }
 0x69b   :  { %2522 = vmatprep.subr.bf16.mxu0 %v2964_v41  ;;  %2586 = vmatprep.subr.bf16.mxu1 %v2982_v5 }
 0x69e   :  { %2524 = vmatpush1.bf16.msra.mxu0 %v2973_v59  ;;  %2588 = vmatpush1.bf16.msra.mxu1 %v2991_v28 }
 0x69f   :  { %2526 = vmatprep.subr.bf16.mxu0 %v2976_v60  ;;  %2590 = vmatprep.subr.bf16.mxu1 %v2994_v32 }
 0x6a2   :  { %2528 = vmatpush1.bf16.msra.mxu0 %v2985_v18  ;;  %2592 = vmatpush1.bf16.msra.mxu1 %v3003_v54 }
 0x6a3   :  { %2530 = vmatprep.subr.bf16.mxu0 %v2988_v19  ;;  %2594 = vmatprep.subr.bf16.mxu1 %v3680_v50 }
 0x6a6   :  { %2532 = vmatpush1.bf16.msra.mxu0 %v2997_v43  ;;  %2596 = vmatpush1.bf16.msra.mxu1 %v3683_v20 }
 0x6a7   :  { %2534 = vmatprep.subr.bf16.mxu0 %v3000_v44  ;;  %2598 = vmatprep.subr.bf16.mxu1 %v3684_v56 }
 0x6aa   :  { %2536 = vmatpush1.bf16.msra.mxu0 %v3797_v8  ;;  %2600 = vmatpush1.bf16.msra.mxu1 %v3798_v9 }
 0x6ab   :  { %2538 = vmatprep.subr.bf16.mxu0 %v3799_v14  ;;  %2602 = vmatprep.subr.bf16.mxu1 %v3800_v17 }
 0x6ae   :  { %2540 = vmatpush1.bf16.msra.mxu0 %v3801_v25  ;;  %2604 = vmatpush1.bf16.msra.mxu1 %v3802_v26 }
 0x6af   :  { %2542 = vmatprep.subr.bf16.mxu0 %v3803_v30  ;;  %2606 = vmatprep.subr.bf16.mxu1 %v3804_v33 }
 0x6b2   :  { %2544 = vmatpush1.bf16.msra.mxu0 %v3805_v37  ;;  %2608 = vmatpush1.bf16.msra.mxu1 %v3806_v42 }
 0x6b3   :  { %2546 = vmatprep.subr.bf16.mxu0 %v3807_v45  ;;  %2610 = vmatprep.subr.bf16.mxu1 %v3808_v46 }
 0x6b6   :  { %2548 = vmatpush1.bf16.msra.mxu0 %v3809_v48  ;;  %2612 = vmatpush1.bf16.msra.mxu1 %v3810_v52 }
 0x6b7   :  { %2550 = vmatprep.subr.bf16.mxu0 %v3811_v55  ;;  %2614 = vmatprep.subr.bf16.mxu1 %v3812_v58 }
 0x6ba   :  { %2552 = vmatpush1.bf16.msra.mxu0 %v3813_v62  ;;  %2616 = vmatpush1.bf16.msra.mxu1 %v3814_v0 }
 0x750   :  { %v1279_v6 = vpop.f32.mrb[12].mxu0  ;;  %v1350_v7 = vpop.f32.mrb[12].mxu1 }
 0x751   :  { %v1280_v16 = vadd.f32 %v1279_v6, %v3815_v13  ;;  %v1281_v23 = vpop.f32.mrb[13].mxu0  ;;  %v1352_v24 = vpop.f32.mrb[13].mxu1  ;;  %v1351_v51 = vadd.f32 %v1350_v7, %v3150_v12 }
 0x752   :  { %v1282_v31 = vadd.f32 %v1281_v23, %v3712_v47  ;;  %v1353_v41 = vadd.f32 %v1352_v24, %v3147_v15 }
 0x753   :  { %v1587_v34 = vmul.f32 -1.442695, %v1280_v16 }
 0x754   :  { %v1588_v40 = vmul.f32 -1.442695, %v1282_v31  ;;  %v1589_v49 = vmul.f32 -1.442695, %v1353_v41 }
 0x755   :  { %2721 = vpow2.f32 %v1587_v34 }
 0x756   :  { %2723 = vpow2.f32 %v1588_v40 }
 0x757   :  { %2725 = vpow2.f32 %v1589_v49 }
 0x758   :  { %2727 = vtanh.f32 %v1351_v51 }
 0x75f   :  { %v2722_v59 = vpop.eup %2721 }
 0x760   :  { %v2724_v60 = vpop.eup %2723  ;;  %v1358_v2 = vadd.f32 1.0, %v2722_v59 }
 0x761   :  { %v1364_v5 = vadd.f32 1.0, %v2724_v60  ;;  %v2726_v18 = vpop.eup %2725 }
 0x762   :  { %2729 = vrcp.f32 %v1358_v2  ;;  %v2728_v19 = vpop.eup %2727  ;;  %v1371_v32 = vadd.f32 1.0, %v2726_v18 }
 0x763   :  { %2731 = vrcp.f32 %v1364_v5 }
 0x764   :  { %2733 = vrcp.f32 %v1371_v32 }
 0x76c   :  { %v2730_v28 = vpop.eup %2729 }
 0x76d   :  { %v2732_v43 = vpop.eup %2731  ;;  %v1375_v44 = vmul.f32 %v2730_v28, %v2728_v19 }
 0x76e   :  { %v1374_v54 = vmul.f32 %v2732_v43, %v3513_v11  ;;  %v2734_v20 = vpop.eup %2733 }
 0x770   :  { %v1376_v50 = vadd.f32 %v1375_v44, %v1374_v54 }
 0x772   :  { %2735 = vtanh.f32 %v1376_v50 }
 0x77c   :  { %v2736_v56 = vpop.eup %2735 }
 0x77d   :  { %v1378_v35 = vmul.f32 %v2736_v56, %v2734_v20 }
 0x77f   :  { %1380 = vst [vmem:[#allocation7 + $0x30] sm:$0xff] %v1378_v35  ;;  %1447 = vmatprep.mubr.f32.mxu0 %v1378_v35  ;;  %1518 = vmatprep.mubr.f32.mxu1 %v1378_v35 }
 0x780   :  { %1448 = vmatmul.mubr.f32.vlgmr.msra.gmra.mrb[14].mxu0 %v1382_v38  ;;  %1519 = vmatmul.mubr.f32.vlgmr.msra.gmra.mrb[14].mxu1 %v1382_v38 }
 0x853   :  { %v1449_v53 = vpop.f32.mrb[14].mxu0  ;;  %v1520_v61 = vpop.f32.mrb[14].mxu1 }
 0x854   :  { %v1450_v27 = vadd.f32 %v1449_v53, %v3815_v13  ;;  %v1451_v4 = vpop.f32.mrb[15].mxu0  ;;  %v1522_v10 = vpop.f32.mrb[15].mxu1  ;;  %v1521_v11 = vadd.f32 %v1520_v61, %v3150_v12 }
 0x855   :  { %v1452_v3 = vadd.f32 %v1451_v4, %v3712_v47  ;;  %v1523_v36 = vadd.f32 %v1522_v10, %v3147_v15 }
 0x856   :  { %v1590_v39 = vmul.f32 -1.442695, %v1450_v27 }
 0x857   :  { %v1591_v29 = vmul.f32 -1.442695, %v1452_v3  ;;  %v1592_v22 = vmul.f32 -1.442695, %v1523_v36 }
 0x858   :  { %2737 = vpow2.f32 %v1590_v39 }
 0x859   :  { %2739 = vpow2.f32 %v1591_v29 }
 0x85a   :  { %2741 = vpow2.f32 %v1592_v22 }
 0x85b   :  { %2743 = vtanh.f32 %v1521_v11 }
 0x862   :  { %v2738_v1 = vpop.eup %2737 }
 0x863   :  { %v2740_v63 = vpop.eup %2739  ;;  %v1528_v57 = vadd.f32 1.0, %v2738_v1 }
 0x864   :  { %v1534_v21 = vadd.f32 1.0, %v2740_v63  ;;  %v2742_v8 = vpop.eup %2741 }
 0x865   :  { %2745 = vrcp.f32 %v1528_v57  ;;  %v2744_v9 = vpop.eup %2743  ;;  %v1541_v14 = vadd.f32 1.0, %v2742_v8 }
 0x866   :  { %2747 = vrcp.f32 %v1534_v21 }
 0x867   :  { %2749 = vrcp.f32 %v1541_v14 }
 0x86f   :  { %v2746_v47 = vpop.eup %2745 }
 0x870   :  { %v2748_v17 = vpop.eup %2747  ;;  %v1545_v25 = vmul.f32 %v2746_v47, %v2744_v9 }
 0x871   :  { %v1544_v26 = vmul.f32 %v2748_v17, %v1376_v50  ;;  %v2750_v15 = vpop.eup %2749 }
 0x873   :  { %v1546_v30 = vadd.f32 %v1545_v25, %v1544_v26 }
 0x875   :  { %2751 = vtanh.f32 %v1546_v30 }
 0x87f   :  { %v2752_v12 = vpop.eup %2751 }
 0x880   :  { %v1548_v33 = vmul.f32 %v2752_v12, %v2750_v15 }
 0x882   :  { %1550 = vst [vmem:[#allocation7 + $0x38] sm:$0xff] %v1548_v33 }
 0x883   :  { %2808 = shalt.err (!%p2805_p6)
}
 0x884   :  { %s2809_s17 = scalar_lea.hbm %s3605_s3, 1024 }
 0x885   :  { %p2810_p7 = scmp.ne.s32.totalorder %s3605_s3, %s2809_s17  ;;  %p2813_p8 = scmp.lt.u32.totalorder %s2809_s17, %s3605_s3 }
 0x887   :  { %p2815_p9 = pnand %p2813_p8, %p2810_p7 }
 0x889   :  { %2818 = shalt.err (!%p2815_p9)
}
 0x88a   :  { %1562 = dma.vmem_to_hbm [thread:$0]  %s1557_s13, 1024, %s3605_s3, [#allocation4], %s2826_s22, %s2826_s22, %s2827_s23  }
 0x88b   :  { %2823 = dma.done.wait [#allocation4], 1024  }
 0x88c   :  { %2824 = vsyncadd [#allocation4], 4294966272 }
 0x88d   :  { %1566 = vsyncpa [#allocation3], 1 }
 0x88e   :  { %1567 = vsyncpa [#allocation6], 1 }
 0x88f   :  { %1568 = vsyncpa [#allocation4], 1 }

</bundles_post_ra>
